<compile_context>
chip_gen: v7x
topology: tpu7x:2x2x1
jax: 0.10.0
libtpu: 0.0.40
codegen_flags: <defaults>
</compile_context>

<pallas_src>
import jax
import jax.numpy as jnp
from jax.experimental import pallas as pl
from jax.experimental.pallas import tpu as pltpu


def head_kernel(xi_ref, xt_ref, xir_ref,
                wpv_ref, bpv_ref,    # fused [pos|val] weights (A,2H) bf16, bias (1,2H) f32
                wk_ref, bk_ref,      # k  : (A, H) bf16, (1, H) f32
                wpi_ref, bpi8_ref,   # pi : (H, T) bf16 pre-scaled by s; bias tiled to (8, H) f32
                wki_ref, bki_ref,    # ki : (A, H) bf16 and (1, H) f32, both pre-scaled by s
                o_ref):
    f32, bf16 = jnp.float32, jnp.bfloat16
    nt = (((1,), (1,)), ((), ()))    # contract dim 1 of both operands: a @ b.T

    # Inputs arrive f32 (no wrapper-side convert round-trip); cast on the VPU.
    xi = xi_ref[0].astype(bf16)      # (T, A)
    xt = xt_ref[0].astype(bf16)
    xir = xir_ref[0].astype(bf16)

    H = wk_ref.shape[1]

    # Fused pos|val projection: (T, A) @ (A, 2H) -> (T, 2H), f32 accumulation.
    pv = jnp.dot(xi, wpv_ref[...], preferred_element_type=f32) + bpv_ref[...]
    key = jnp.dot(xt, wk_ref[...], preferred_element_type=f32) + bk_ref[...]
    key_i = jnp.dot(xir, wki_ref[...], preferred_element_type=f32) + bki_ref[...]

    pvb = pv.astype(bf16)
    pos = pvb[:, :H]                 # lanes 0..H-1: no lane relayout
    keyb = key.astype(bf16)
    key_ib = key_i.astype(bf16)      # already carries the second H^-0.5

    # Reassociated logit chain (both H^-0.5 scales folded into wpi_ref / ki):
    #   wei = pos @ (key.T @ (s*Wpi.T)) @ key_i_s.T  +  bpi @ key_i_s.T
    m1t = jnp.dot(wpi_ref[...], keyb, preferred_element_type=f32)          # (H, H)
    m2t = jnp.dot(key_ib, m1t.astype(bf16), preferred_element_type=f32)    # (T, H)
    wei = jax.lax.dot_general(pos, m2t.astype(bf16), nt,
                              preferred_element_type=f32)                  # (T, T)
    brow = jax.lax.dot_general(bpi8_ref[...].astype(bf16), key_ib, nt,
                               preferred_element_type=f32)                 # (8, T)
    wei = wei + brow[0:1, :]

    # Causal mask from a (T,1)/(1,T) iota pair (no (T,T) iota materialized).
    T = wei.shape[0]
    row = jax.lax.broadcasted_iota(jnp.int32, (T, 1), 0)
    col = jax.lax.broadcasted_iota(jnp.int32, (1, T), 1)
    wei = jnp.where(col <= row, wei, -jnp.inf)

    # Numerically stable softmax; normalize *after* the PV matmul
    # (T*H multiplies instead of T*T), reciprocal on the EUP.
    m = jnp.max(wei, axis=-1, keepdims=True)
    p = jnp.exp(wei - m)
    denom = jnp.sum(p, axis=-1, keepdims=True)

    val = pvb[:, H:]                 # single (T, H) lane rotate per step
    out = jnp.dot(p.astype(bf16), val, preferred_element_type=f32)
    o_ref[0] = (out * pl.reciprocal(denom, approx=True)).astype(o_ref.dtype)


def _build_head_call(BC, T, A, H, out_dtype, deep_input_buffers):
    if deep_input_buffers:
        # 3-deep buffering on the streamed activations only (weights are
        # grid-invariant).  Raises on builds without pl.Buffered support;
        # caller falls back to the default 2-deep pipeline.
        x_spec = pl.BlockSpec((1, T, A), lambda i: (i, 0, 0),
                              pipeline_mode=pl.Buffered(3))
    else:
        x_spec = pl.BlockSpec((1, T, A), lambda i: (i, 0, 0))
    o_spec = pl.BlockSpec((1, T, H), lambda i: (i, 0, 0))

    def cspec(shape):  # grid-invariant blocks: weights / biases (DMA'd once)
        return pl.BlockSpec(shape, lambda i: (0, 0))

    return pl.pallas_call(
        head_kernel,
        out_shape=jax.ShapeDtypeStruct((BC, T, H), out_dtype),
        grid_spec=pltpu.PrefetchScalarGridSpec(
            num_scalar_prefetch=0,
            grid=(BC,),
            in_specs=[
                x_spec, x_spec, x_spec,
                cspec((A, 2 * H)), cspec((1, 2 * H)),   # fused pos|val
                cspec((A, H)), cspec((1, H)),           # k
                cspec((H, T)), cspec((8, H)),           # pi (pre-scaled), bias x8
                cspec((A, H)), cspec((1, H)),           # ki (pre-scaled)
            ],
            out_specs=o_spec),
        compiler_params=pltpu.CompilerParams(
            dimension_semantics=("parallel",),
            vmem_limit_bytes=48 * 1024 * 1024),
    )


def head_forward(idx_i, idx_t, idx_ir, params):
    B, C, T, A = idx_i.shape
    H = params["wp"].shape[0]
    s = float(H) ** -0.5
    f32, bf16 = jnp.float32, jnp.bfloat16

    # Weight prep (tiny, one-off): transpose to (in, out), fuse pos|val, fold
    # both H^-0.5 scales, cast MXU operands to bf16 (biases stay f32).
    wpv = jnp.concatenate([params["wp"].T, params["wv"].T], axis=1).astype(bf16)
    bpv = jnp.concatenate([params["bp"], params["bv"]]).reshape(1, 2 * H).astype(f32)
    wk = params["wk"].T.astype(bf16)
    bk = params["bk"].reshape(1, H).astype(f32)
    wpi = (params["wpi"] * s).astype(bf16)             # (H, T): absorbs 1st H^-0.5
    bpi8 = jnp.tile(params["bpi"].reshape(1, H), (8, 1)).astype(f32)
    wki = (params["wki"].T * s).astype(bf16)           # (A, H): absorbs 2nd H^-0.5
    bki = (params["bki"] * s).reshape(1, H).astype(f32)

    BC = B * C
    # Inputs stay f32 — the kernel casts to bf16 internally, so no standalone
    # HBM convert round-trip is added on the (DMA-bound) input stream.
    xi = idx_i.reshape(BC, T, A)
    xt = idx_t.reshape(BC, T, A)
    xir = idx_ir.reshape(BC, T, A)

    args = (xi, xt, xir, wpv, bpv, wk, bk, wpi, bpi8, wki, bki)
    try:
        out = _build_head_call(BC, T, A, H, bf16, True)(*args)
        out = jax.block_until_ready(out)
    except Exception:
        # JAX/Mosaic build without Buffered(3) support on pallas_call specs.
        out = _build_head_call(BC, T, A, H, bf16, False)(*args)
        out = jax.block_until_ready(out)

    return out.reshape(B, C, T, H)


def head_reference(idx_i, idx_t, idx_ir, params):
    """Pure-JAX f32 reference mirroring the PyTorch forward."""
    def lin(x, w, b):
        return jnp.einsum("...a,ha->...h", x, w) + b
    pos = lin(idx_i, params["wp"], params["bp"])
    key = lin(idx_t, params["wk"], params["bk"])
    key_i = lin(idx_ir, params["wki"], params["bki"])
    val = lin(idx_i, params["wv"], params["bv"])
    H = key.shape[-1]
    wei = jnp.einsum("bcth,bcsh->bcts", pos, key) * H ** -0.5
    wei = lin(wei, params["wpi"], params["bpi"])
    wei = jnp.einsum("bcth,bcsh->bcts", wei, key_i) * H ** -0.5
    T = idx_i.shape[2]
    tril = jnp.tril(jnp.ones((T, T)))
    wei = jnp.where(tril == 0, -jnp.inf, wei)
    wei = jax.nn.softmax(wei, axis=-1)
    return jnp.einsum("bcts,bcsh->bcth", wei, val)


def init_params(key, image_size, head_size):
    """Deterministic init; nn.Linear convention: W=(out,in), b=(out,)."""
    ks = jax.random.split(key, 10)
    scale = image_size ** -0.5
    names = ["p", "k", "pi", "ki", "v"]
    params = {}
    for i, n in enumerate(names):
        params[f"w{n}"] = scale * jax.random.normal(
            ks[2 * i], (head_size, image_size), dtype=jnp.float32)
        params[f"b{n}"] = scale * jax.random.normal(
            ks[2 * i + 1], (head_size,), dtype=jnp.float32)
    return params


if __name__ == "__main__":
    # Small shapes consistent with the module: T == A == image_size.
    image_size = 128   # module default is 512; shrunk for the synthetic test
    head_size = 64
    B, C = 2, 2        # B*C = 4 grid steps (even: balances v7x's 2 TCs)
    T, A = image_size, image_size

    root = jax.random.PRNGKey(0)
    k_i, k_t, k_ir, k_p = jax.random.split(root, 4)
    idx_i = jax.random.normal(k_i, (B, C, T, A), dtype=jnp.float32)
    idx_t = jax.random.normal(k_t, (B, C, T, A), dtype=jnp.float32)
    idx_ir = jax.random.normal(k_ir, (B, C, T, A), dtype=jnp.float32)
    params = init_params(k_p, image_size, head_size)

    out = head_forward(idx_i, idx_t, idx_ir, params)
    out = jax.block_until_ready(out)

    ref = head_reference(idx_i, idx_t, idx_ir, params)
    assert out.shape == (B, C, T, head_size)
    # bf16 MXU operands + bf16 output store + approx reciprocal vs. the f32
    # reference: bound reflects a 3-matmul bf16 chain on O(1) logits.
    out_f32 = out.astype(jnp.float32)
    err = float(jnp.max(jnp.abs(out_f32 - ref)))
    assert jnp.allclose(out_f32, ref, atol=4e-2, rtol=4e-2), (
        f"mismatch vs reference, max abs err = {err}")

    print("KERNEL_OK")
</pallas_src>

<mosaic_0001>
module attributes {stable_mosaic.version = 11 : i64} {
  func.func @head_kernel(%arg0: i32, %arg1: memref<1x128x128xf32, #tpu.memory_space<vmem>>, %arg2: memref<1x128x128xf32, #tpu.memory_space<vmem>>, %arg3: memref<1x128x128xf32, #tpu.memory_space<vmem>>, %arg4: memref<128x128xbf16, #tpu.memory_space<vmem>>, %arg5: memref<1x128xf32, #tpu.memory_space<vmem>>, %arg6: memref<128x64xbf16, #tpu.memory_space<vmem>>, %arg7: memref<1x64xf32, #tpu.memory_space<vmem>>, %arg8: memref<64x128xbf16, #tpu.memory_space<vmem>>, %arg9: memref<8x64xf32, #tpu.memory_space<vmem>>, %arg10: memref<128x64xbf16, #tpu.memory_space<vmem>>, %arg11: memref<1x64xf32, #tpu.memory_space<vmem>>, %arg12: memref<1x128x64xbf16, #tpu.memory_space<vmem>>) attributes {dimension_semantics = [#tpu.dimension_semantics<parallel>], iteration_bounds = array<i64: 4>, scalar_prefetch = 0 : i64, scratch_operands = 0 : i64, tpu.core_type = #tpu.core_type<tc>, window_params = [{transform_indices = @transform_0, window_bounds = array<i64: 1, 128, 128>}, {transform_indices = @transform_1, window_bounds = array<i64: 1, 128, 128>}, {transform_indices = @transform_2, window_bounds = array<i64: 1, 128, 128>}, {pipeline_mode = #tpu.pipeline_mode<synchronous>, transform_indices = @transform_3, window_bounds = array<i64: 128, 128>}, {pipeline_mode = #tpu.pipeline_mode<synchronous>, transform_indices = @transform_4, window_bounds = array<i64: 1, 128>}, {pipeline_mode = #tpu.pipeline_mode<synchronous>, transform_indices = @transform_5, window_bounds = array<i64: 128, 64>}, {pipeline_mode = #tpu.pipeline_mode<synchronous>, transform_indices = @transform_6, window_bounds = array<i64: 1, 64>}, {pipeline_mode = #tpu.pipeline_mode<synchronous>, transform_indices = @transform_7, window_bounds = array<i64: 64, 128>}, {pipeline_mode = #tpu.pipeline_mode<synchronous>, transform_indices = @transform_8, window_bounds = array<i64: 8, 64>}, {pipeline_mode = #tpu.pipeline_mode<synchronous>, transform_indices = @transform_9, window_bounds = array<i64: 128, 64>}, {pipeline_mode = #tpu.pipeline_mode<synchronous>, transform_indices = @transform_10, window_bounds = array<i64: 1, 64>}, {transform_indices = @transform_11, window_bounds = array<i64: 1, 128, 64>}]} {
    %c0 = arith.constant 0 : index
    %c0_0 = arith.constant 0 : index
    %c0_1 = arith.constant 0 : index
    %0 = vector.load %arg1[%c0, %c0_0, %c0_1] : memref<1x128x128xf32, #tpu.memory_space<vmem>>, vector<1x128x128xf32>
    %1 = vector.shape_cast %0 : vector<1x128x128xf32> to vector<128x128xf32>
    %2 = arith.truncf %1 : vector<128x128xf32> to vector<128x128xbf16>
    %c0_2 = arith.constant 0 : index
    %c0_3 = arith.constant 0 : index
    %c0_4 = arith.constant 0 : index
    %3 = vector.load %arg2[%c0_2, %c0_3, %c0_4] : memref<1x128x128xf32, #tpu.memory_space<vmem>>, vector<1x128x128xf32>
    %4 = vector.shape_cast %3 : vector<1x128x128xf32> to vector<128x128xf32>
    %5 = arith.truncf %4 : vector<128x128xf32> to vector<128x128xbf16>
    %c0_5 = arith.constant 0 : index
    %c0_6 = arith.constant 0 : index
    %c0_7 = arith.constant 0 : index
    %6 = vector.load %arg3[%c0_5, %c0_6, %c0_7] : memref<1x128x128xf32, #tpu.memory_space<vmem>>, vector<1x128x128xf32>
    %7 = vector.shape_cast %6 : vector<1x128x128xf32> to vector<128x128xf32>
    %8 = arith.truncf %7 : vector<128x128xf32> to vector<128x128xbf16>
    %c0_8 = arith.constant 0 : index
    %c0_9 = arith.constant 0 : index
    %9 = vector.load %arg4[%c0_8, %c0_9] : memref<128x128xbf16, #tpu.memory_space<vmem>>, vector<128x128xbf16>
    %cst = arith.constant dense<0.000000e+00> : vector<128x128xf32>
    %10 = tpu.matmul %2, %9, %cst {dimension_numbers = #tpu.dot_dimension_numbers<[1], [0], [0], [1], [0, 0, 1, 1], [], []>} : vector<128x128xbf16>, vector<128x128xbf16>, vector<128x128xf32> -> vector<128x128xf32>
    %c0_10 = arith.constant 0 : index
    %c0_11 = arith.constant 0 : index
    %11 = vector.load %arg5[%c0_10, %c0_11] : memref<1x128xf32, #tpu.memory_space<vmem>>, vector<1x128xf32>
    %12 = vector.broadcast %11 : vector<1x128xf32> to vector<128x128xf32>
    %13 = arith.addf %10, %12 : vector<128x128xf32>
    %c0_12 = arith.constant 0 : index
    %c0_13 = arith.constant 0 : index
    %14 = vector.load %arg6[%c0_12, %c0_13] : memref<128x64xbf16, #tpu.memory_space<vmem>>, vector<128x64xbf16>
    %cst_14 = arith.constant dense<0.000000e+00> : vector<128x64xf32>
    %15 = tpu.matmul %5, %14, %cst_14 {dimension_numbers = #tpu.dot_dimension_numbers<[1], [0], [0], [1], [0, 0, 1, 1], [], []>} : vector<128x128xbf16>, vector<128x64xbf16>, vector<128x64xf32> -> vector<128x64xf32>
    %c0_15 = arith.constant 0 : index
    %c0_16 = arith.constant 0 : index
    %16 = vector.load %arg7[%c0_15, %c0_16] : memref<1x64xf32, #tpu.memory_space<vmem>>, vector<1x64xf32>
    %17 = vector.broadcast %16 : vector<1x64xf32> to vector<128x64xf32>
    %18 = arith.addf %15, %17 : vector<128x64xf32>
    %c0_17 = arith.constant 0 : index
    %c0_18 = arith.constant 0 : index
    %19 = vector.load %arg10[%c0_17, %c0_18] : memref<128x64xbf16, #tpu.memory_space<vmem>>, vector<128x64xbf16>
    %cst_19 = arith.constant dense<0.000000e+00> : vector<128x64xf32>
    %20 = tpu.matmul %8, %19, %cst_19 {dimension_numbers = #tpu.dot_dimension_numbers<[1], [0], [0], [1], [0, 0, 1, 1], [], []>} : vector<128x128xbf16>, vector<128x64xbf16>, vector<128x64xf32> -> vector<128x64xf32>
    %c0_20 = arith.constant 0 : index
    %c0_21 = arith.constant 0 : index
    %21 = vector.load %arg11[%c0_20, %c0_21] : memref<1x64xf32, #tpu.memory_space<vmem>>, vector<1x64xf32>
    %22 = vector.broadcast %21 : vector<1x64xf32> to vector<128x64xf32>
    %23 = arith.addf %20, %22 : vector<128x64xf32>
    %24 = arith.truncf %13 : vector<128x128xf32> to vector<128x128xbf16>
    %25 = vector.extract_strided_slice %24 {offsets = [0, 0], sizes = [128, 64], strides = [1, 1]} : vector<128x128xbf16> to vector<128x64xbf16>
    %26 = arith.truncf %18 : vector<128x64xf32> to vector<128x64xbf16>
    %27 = arith.truncf %23 : vector<128x64xf32> to vector<128x64xbf16>
    %c0_22 = arith.constant 0 : index
    %c0_23 = arith.constant 0 : index
    %28 = vector.load %arg8[%c0_22, %c0_23] : memref<64x128xbf16, #tpu.memory_space<vmem>>, vector<64x128xbf16>
    %cst_24 = arith.constant dense<0.000000e+00> : vector<64x64xf32>
    %29 = tpu.matmul %28, %26, %cst_24 {dimension_numbers = #tpu.dot_dimension_numbers<[1], [0], [0], [1], [0, 0, 1, 1], [], []>} : vector<64x128xbf16>, vector<128x64xbf16>, vector<64x64xf32> -> vector<64x64xf32>
    %30 = arith.truncf %29 : vector<64x64xf32> to vector<64x64xbf16>
    %cst_25 = arith.constant dense<0.000000e+00> : vector<128x64xf32>
    %31 = tpu.matmul %27, %30, %cst_25 {dimension_numbers = #tpu.dot_dimension_numbers<[1], [0], [0], [1], [0, 0, 1, 1], [], []>} : vector<128x64xbf16>, vector<64x64xbf16>, vector<128x64xf32> -> vector<128x64xf32>
    %32 = arith.truncf %31 : vector<128x64xf32> to vector<128x64xbf16>
    %cst_26 = arith.constant dense<0.000000e+00> : vector<128x128xf32>
    %33 = tpu.matmul %25, %32, %cst_26 {dimension_numbers = #tpu.dot_dimension_numbers<[1], [1], [0], [0], [0, 0, 1, 0], [], []>} : vector<128x64xbf16>, vector<128x64xbf16>, vector<128x128xf32> -> vector<128x128xf32>
    %c0_27 = arith.constant 0 : index
    %c0_28 = arith.constant 0 : index
    %34 = vector.load %arg9[%c0_27, %c0_28] : memref<8x64xf32, #tpu.memory_space<vmem>>, vector<8x64xf32>
    %35 = arith.truncf %34 : vector<8x64xf32> to vector<8x64xbf16>
    %cst_29 = arith.constant dense<0.000000e+00> : vector<8x128xf32>
    %36 = tpu.matmul %35, %27, %cst_29 {dimension_numbers = #tpu.dot_dimension_numbers<[1], [1], [0], [0], [0, 0, 1, 0], [], []>} : vector<8x64xbf16>, vector<128x64xbf16>, vector<8x128xf32> -> vector<8x128xf32>
    %37 = vector.extract_strided_slice %36 {offsets = [0, 0], sizes = [1, 128], strides = [1, 1]} : vector<8x128xf32> to vector<1x128xf32>
    %38 = vector.broadcast %37 : vector<1x128xf32> to vector<128x128xf32>
    %39 = arith.addf %33, %38 : vector<128x128xf32>
    %40 = tpu.iota {dimensions = array<i32: 0>} : vector<128x1xi32>
    %41 = tpu.iota {dimensions = array<i32: 1>} : vector<1x128xi32>
    %42 = vector.broadcast %41 : vector<1x128xi32> to vector<128x128xi32>
    %43 = vector.broadcast %40 : vector<128x1xi32> to vector<128x128xi32>
    %44 = arith.cmpi sle, %42, %43 : vector<128x128xi32>
    %cst_30 = arith.constant 0xFF800000 : f32
    %45 = vector.broadcast %cst_30 : f32 to vector<128x128xf32>
    %46 = arith.select %44, %39, %45 : vector<128x128xi1>, vector<128x128xf32>
    %cst_31 = arith.constant dense<0xFF800000> : vector<128xf32>
    %47 = vector.multi_reduction <maximumf>, %46, %cst_31 [1] : vector<128x128xf32> to vector<128xf32>
    %48 = vector.shape_cast %47 : vector<128xf32> to vector<128x1xf32>
    %49 = vector.broadcast %48 : vector<128x1xf32> to vector<128x128xf32>
    %50 = arith.subf %46, %49 : vector<128x128xf32>
    %51 = math.exp %50 : vector<128x128xf32>
    %cst_32 = arith.constant dense<0.000000e+00> : vector<128xf32>
    %52 = vector.multi_reduction <add>, %51, %cst_32 [1] : vector<128x128xf32> to vector<128xf32>
    %53 = vector.shape_cast %52 : vector<128xf32> to vector<128x1xf32>
    %54 = vector.extract_strided_slice %24 {offsets = [0, 64], sizes = [128, 64], strides = [1, 1]} : vector<128x128xbf16> to vector<128x64xbf16>
    %55 = arith.truncf %51 : vector<128x128xf32> to vector<128x128xbf16>
    %cst_33 = arith.constant dense<0.000000e+00> : vector<128x64xf32>
    %56 = tpu.matmul %55, %54, %cst_33 {dimension_numbers = #tpu.dot_dimension_numbers<[1], [0], [0], [1], [0, 0, 1, 1], [], []>} : vector<128x128xbf16>, vector<128x64xbf16>, vector<128x64xf32> -> vector<128x64xf32>
    %57 = tpu.reciprocal %53 {approx = true} : vector<128x1xf32> -> vector<128x1xf32>
    %58 = vector.broadcast %57 : vector<128x1xf32> to vector<128x64xf32>
    %59 = arith.mulf %56, %58 : vector<128x64xf32>
    %60 = arith.truncf %59 : vector<128x64xf32> to vector<128x64xbf16>
    %c0_34 = arith.constant 0 : index
    %c0_35 = arith.constant 0 : index
    %c0_36 = arith.constant 0 : index
    %61 = vector.load %arg12[%c0_34, %c0_35, %c0_36] : memref<1x128x64xbf16, #tpu.memory_space<vmem>>, vector<1x128x64xbf16>
    %62 = vector.shape_cast %61 : vector<1x128x64xbf16> to vector<128x64xbf16>
    %63 = vector.shape_cast %60 : vector<128x64xbf16> to vector<1x128x64xbf16>
    tpu.vector_store %arg12[%c0_34, %c0_35, %c0_36], %63 {strides = array<i32>} : memref<1x128x64xbf16, #tpu.memory_space<vmem>>, vector<1x128x64xbf16>,
    return
  }
  func.func @transform_0(%arg0: i32) -> (i32, i32, i32) {
    %c0_i32 = arith.constant 0 : i32
    %c0_i32_0 = arith.constant 0 : i32
    %c0_i32_1 = arith.constant 0 : i32
    return %arg0, %c0_i32, %c0_i32_0 : i32, i32, i32
  }
  func.func @transform_1(%arg0: i32) -> (i32, i32, i32) {
    %c0_i32 = arith.constant 0 : i32
    %c0_i32_0 = arith.constant 0 : i32
    %c0_i32_1 = arith.constant 0 : i32
    return %arg0, %c0_i32, %c0_i32_0 : i32, i32, i32
  }
  func.func @transform_2(%arg0: i32) -> (i32, i32, i32) {
    %c0_i32 = arith.constant 0 : i32
    %c0_i32_0 = arith.constant 0 : i32
    %c0_i32_1 = arith.constant 0 : i32
    return %arg0, %c0_i32, %c0_i32_0 : i32, i32, i32
  }
  func.func @transform_3(%arg0: i32) -> (i32, i32) {
    %c0_i32 = arith.constant 0 : i32
    %c0_i32_0 = arith.constant 0 : i32
    %c0_i32_1 = arith.constant 0 : i32
    return %c0_i32, %c0_i32_0 : i32, i32
  }
  func.func @transform_4(%arg0: i32) -> (i32, i32) {
    %c0_i32 = arith.constant 0 : i32
    %c0_i32_0 = arith.constant 0 : i32
    %c0_i32_1 = arith.constant 0 : i32
    return %c0_i32, %c0_i32_0 : i32, i32
  }
  func.func @transform_5(%arg0: i32) -> (i32, i32) {
    %c0_i32 = arith.constant 0 : i32
    %c0_i32_0 = arith.constant 0 : i32
    %c0_i32_1 = arith.constant 0 : i32
    return %c0_i32, %c0_i32_0 : i32, i32
  }
  func.func @transform_6(%arg0: i32) -> (i32, i32) {
    %c0_i32 = arith.constant 0 : i32
    %c0_i32_0 = arith.constant 0 : i32
    %c0_i32_1 = arith.constant 0 : i32
    return %c0_i32, %c0_i32_0 : i32, i32
  }
  func.func @transform_7(%arg0: i32) -> (i32, i32) {
    %c0_i32 = arith.constant 0 : i32
    %c0_i32_0 = arith.constant 0 : i32
    %c0_i32_1 = arith.constant 0 : i32
    return %c0_i32, %c0_i32_0 : i32, i32
  }
  func.func @transform_8(%arg0: i32) -> (i32, i32) {
    %c0_i32 = arith.constant 0 : i32
    %c0_i32_0 = arith.constant 0 : i32
    %c0_i32_1 = arith.constant 0 : i32
    return %c0_i32, %c0_i32_0 : i32, i32
  }
  func.func @transform_9(%arg0: i32) -> (i32, i32) {
    %c0_i32 = arith.constant 0 : i32
    %c0_i32_0 = arith.constant 0 : i32
    %c0_i32_1 = arith.constant 0 : i32
    return %c0_i32, %c0_i32_0 : i32, i32
  }
  func.func @transform_10(%arg0: i32) -> (i32, i32) {
    %c0_i32 = arith.constant 0 : i32
    %c0_i32_0 = arith.constant 0 : i32
    %c0_i32_1 = arith.constant 0 : i32
    return %c0_i32, %c0_i32_0 : i32, i32
  }
  func.func @transform_11(%arg0: i32) -> (i32, i32, i32) {
    %c0_i32 = arith.constant 0 : i32
    %c0_i32_0 = arith.constant 0 : i32
    %c0_i32_1 = arith.constant 0 : i32
    return %arg0, %c0_i32, %c0_i32_0 : i32, i32, i32
  }
}

</mosaic_0001>

<bundles_post_ra>
// kernel: tpu_custom_call.1
= control target key start
LH: loop header
LB: loop body
LE: loop exit
PB: predicated region body
PF: predicated region fallthrough
CT: control target
= control target key end

     0   :  { %s3510_s0 = inlined_call_operand.hbm [shape: f32[4,128,128], index: 0, kind: input, shape index: {}]   ;;  %s3511_s1 = inlined_call_operand.hbm [shape: f32[4,128,128], index: 1, kind: input, shape index: {}]   ;;  %s3512_s2 = inlined_call_operand.hbm [shape: f32[4,128,128], index: 2, kind: input, shape index: {}]   ;;  %s3513_s3 = inlined_call_operand.vmem [shape: bf16[128,128], index: 3, kind: input, shape index: {}]   ;;  %s3514_s4 = inlined_call_operand.vmem [shape: f32[1,128], index: 4, kind: input, shape index: {}]   ;;  %s3515_s5 = inlined_call_operand.vmem [shape: bf16[128,64], index: 5, kind: input, shape index: {}]   ;;  %s3516_s6 = inlined_call_operand.vmem [shape: f32[1,64], index: 6, kind: input, shape index: {}]   ;;  %s3517_s7 = inlined_call_operand.vmem [shape: bf16[64,128], index: 7, kind: input, shape index: {}]   ;;  %s3518_s8 = inlined_call_operand.vmem [shape: f32[8,64], index: 8, kind: input, shape index: {}]   ;;  %s3519_s9 = inlined_call_operand.vmem [shape: bf16[128,64], index: 9, kind: input, shape index: {}]   ;;  %s3520_s10 = inlined_call_operand.vmem [shape: f32[1,64], index: 10, kind: input, shape index: {}]   ;;  %s3521_s11 = inlined_call_operand.vmem [shape: bf16[4,128,64], index: 11, kind: output, shape index: {}]  }
   0x1   :  { %3530 = sst [smem:[#allocation11_spill]] %s3511_s1 }
   0x2   :  { %3531 = sst [smem:[#allocation12_spill]] %s3518_s8 }
   0x3   :  { %3532 = sst [smem:[#allocation13_spill]] %s3520_s10 }
   0x4   :  { %3533 = sst [smem:[#allocation14_spill]] %s3521_s11 }
   0x5   :  { %16 = vsyncpa [#allocation3], 0 }
   0x6   :  { %18 = vsyncpa [#allocation3 + $0x1], 0 }
   0x7   :  { %19 = vsyncpa [#allocation5], 0 }
   0x8   :  { %21 = vsyncpa [#allocation5 + $0x1], 0  ;;  %s2846_s17 = smov 0   ;;  %s2848_s18 = smov 0  }
   0x9   :  { %s2850_s19 = smov 0   ;;  %s2852_s20 = smov 0  }
   0xa LB: > { %s2865_s21 = sadd.s32 4294967295, %s2776_s20   ;;  %s2868_s22 = sadd.s32 1, %s2776_s20   ;;  %s2776_s20 = sphi %s2852_s20, %s3551_s20   ;;  %s2772_s19 = sphi %s2850_s19, %s3555_s19   ;;  %s2768_s18 = sphi %s2848_s18, %s3554_s18   ;;  %s2764_s17 = sphi %s2846_s17, %s3553_s17  }
   0xb   : > { %3534 = sst [smem:[#allocation9_spill]] %s2868_s22  ;;  %s31_s23 = ssub.s32 %s2776_s20, %s2868_s22 }
   0xc   : > { %s34_s24 = sadd.s32 1, %s2772_s19  ;;  %p32_p0 = scmp.eq.s32.totalorder %s31_s23, 0 }
   0xd   : > { %p41_p1 = scmp.ne.s32.totalorder %s2772_s19, %s2768_s18  ;;  %p42_p2 = scmp.eq.s32.totalorder %s2776_s20, 0 }
   0xe   : > { %p47_p3 = scmp.ne.s32.totalorder %s2768_s18, %s2764_s17  ;;  %p48_p5 = scmp.eq.s32.totalorder %s2865_s21, 0 }
   0xf   : > { %s2878_s25 = scalar_select %p32_p0, %s2772_s19, %s34_s24  }
  0x10   : > { %p43_p4 = por %p42_p2, %p41_p1  ;;  %p2518_p6 = scmp.lt.s32.totalorder %s2776_s20, 4 }
  0x11   : > { %3535 = sst [smem:[#allocation10_spill]] %s2878_s25  ;;  %p2882_p7 = por %p48_p5, %p47_p3 }
  0x12   : > { %s3522_s27 = sand.u32 1, %s2772_s19   ;;  %s2892_s29 = sshll.u32 %s2776_s20, 11 }
  0x13   : > { %s3536_s26 = scalar_select %p2882_p7, 1, 0 }
  0x14   : > { %s2889_s28 = sshll.u32 %s3522_s27, 7  ;;  %p2894_p8 = pnand %p2518_p6, %p43_p4 }
  0x15   : > { %s362_s12 = sand.u32 1, %s2776_s20   ;;  %s3538_s1 = sld [smem:[#allocation11_spill]] }
  0x16   : > { %s366_s16 = scalar_lea.vmem [#allocation4], %s2889_s28  ;;  %s2910_s23 = scalar_lea.sflag [#allocation5], %s362_s12 }
  0x17   : > { %s373_s17 = sshll.u32 %s366_s16, 4  ;;  %p2916_p12 = pneg %p2894_p8  ;;  %s2907_s17 = int_to_ptr.vmem [resolvable:$true] %s373_s17 }
  0x1b   : > { %s2903_s15 = scalar_lea.hbm %s3538_s1, %s2892_s29  ;;  %s2653_s16 = scalar_lea.hbm %s3538_s1, 8192 }
  0x1c   : > { %s2648_s24 = scalar_lea.hbm %s2903_s15, 2048  ;;  %p2654_p1 = scmp.lt.u32.totalorder %s2903_s15, %s3538_s1 }
  0x1d   : > { %p2649_p11 = scmp.ne.s32.totalorder %s2903_s15, %s2648_s24  ;;  %p2655_p2 = scmp.lt.u32.totalorder %s2653_s16, %s2648_s24 }
  0x1e   : > { %p2657_p4 = scmp.lt.u32.totalorder %s2648_s24, %s2903_s15 }
  0x1f   : > { %p2651_p13 = pnand %p2916_p12, %p2649_p11  ;;  %p2656_p3 = por %p2655_p2, %p2654_p1 }
  0x21   : > { %p2652_p0 = pneg %p2651_p13  ;;  %p2658_p5 = por %p2657_p4, %p2656_p3 }
  0x23   : > { %p2659_p6 = pnand %p2658_p5, %p2652_p0 }
  0x25   : > { %2662 = shalt.err (!%p2659_p6)
}
  0x26   : > { %s2663_s12 = scalar_lea.vmem %s2907_s17, 2048  ;;  %s2778_s13 = smov [#allocation4]  }
  0x27   : > { %p2664_p11 = scmp.ne.s32.totalorder %s2907_s17, %s2663_s12  ;;  %s2668_s14 = sshll.u32 %s2778_s13, 4  ;;  %s2669_s14 = int_to_ptr.vmem [resolvable:$false] %s2668_s14 }
  0x28   : > { %s2670_s22 = scalar_lea.vmem %s2669_s14, 4096  ;;  %p2671_p10 = scmp.lt.s32.totalorder %s2907_s17, %s2669_s14 }
  0x29   : > { %p2666_p13 = pnand %p2664_p11, %p2916_p12  ;;  %p2672_p7 = scmp.lt.s32.totalorder %s2670_s22, %s2663_s12 }
  0x2b   : > { %p2667_p9 = pneg %p2666_p13  ;;  %p2673_p1 = por %p2672_p7, %p2671_p10 }
  0x2d   : > { %p2674_p2 = pnand %p2673_p1, %p2667_p9 }
  0x2f   : > { %2677 = shalt.err (!%p2674_p2)
}
  0x30   : > { %s3526_s25 = smov 128   ;;  %s3528_s24 = smov 8  }
  0x31   : > { %2514 = dma.hbm_to_vmem [thread:$0]  (!%p2894_p8), %s2903_s15, 2048, %s2907_s17, %s2910_s23, %s3526_s25, %s3526_s25, %s3528_s24  }
  0x32   : > { %p3540_p7 = scmp.lt.s32.totalorder %s2776_s20, 5  ;;  %p3541_p9 = scmp.ge.s32.totalorder %s2776_s20, 1 }
  0x33   : > { %s2955_s14 = scalar_lea.hbm %s3510_s0, %s2892_s29  ;;  %s345_s22 = scalar_lea.vmem [#allocation2], %s2889_s28 }
  0x34   : > { %p2947_p10 = pnand %p3541_p9, %p3540_p7  ;;  %s352_s1 = sshll.u32 %s345_s22, 4  ;;  %s2958_s1 = int_to_ptr.vmem [resolvable:$true] %s352_s1 }
  0x35   : > { %s2964_s20 = scalar_lea.hbm %s3512_s2, %s2892_s29  ;;  %s3543_s25 = sand.u32 1, %s2772_s19  }
  0x36   : > { %s3542_s16 = scalar_select %p2947_p10, 1, 0 }
  0x37   : > { %s2968_s24 = scalar_lea.sflag [#allocation3], %s3543_s25  ;;  %s2678_s11 = scalar_lea.hbm %s2955_s14, 2048 }
  0x38   : > { %p2679_p0 = scmp.ne.s32.totalorder %s2955_s14, %s2678_s11  ;;  %s2683_s8 = scalar_lea.hbm %s3510_s0, 8192 }
  0x39   : > { %p2684_p5 = scmp.lt.u32.totalorder %s2955_s14, %s3510_s0  ;;  %p2685_p6 = scmp.lt.u32.totalorder %s2683_s8, %s2678_s11 }
  0x3a   : > { %p2681_p3 = pnand %p2679_p0, %p2916_p12  ;;  %p2687_p13 = scmp.lt.u32.totalorder %s2678_s11, %s2955_s14 }
  0x3b   : > { %p2686_p11 = por %p2685_p6, %p2684_p5 }
  0x3c   : > { %p2682_p4 = pneg %p2681_p3 }
  0x3d   : > { %p2688_p1 = por %p2687_p13, %p2686_p11 }
  0x3f   : > { %p2689_p2 = pnand %p2688_p1, %p2682_p4 }
  0x41   : > { %2692 = shalt.err (!%p2689_p2)
}
  0x42   : > { %s2693_s29 = scalar_lea.vmem %s2958_s1, 2048  ;;  %s2781_s25 = smov [#allocation2]  }
  0x43   : > { %p2694_p7 = scmp.ne.s32.totalorder %s2958_s1, %s2693_s29  ;;  %s2698_s15 = sshll.u32 %s2781_s25, 4  ;;  %s2699_s15 = int_to_ptr.vmem [resolvable:$false] %s2698_s15 }
  0x44   : > { %s2700_s10 = scalar_lea.vmem %s2699_s15, 4096  ;;  %p2701_p3 = scmp.lt.s32.totalorder %s2958_s1, %s2699_s15 }
  0x45   : > { %p2696_p9 = pnand %p2694_p7, %p2916_p12  ;;  %p2702_p10 = scmp.lt.s32.totalorder %s2700_s10, %s2693_s29 }
  0x47   : > { %p2697_p0 = pneg %p2696_p9  ;;  %p2703_p5 = por %p2702_p10, %p2701_p3 }
  0x49   : > { %p2704_p6 = pnand %p2703_p5, %p2697_p0 }
  0x4b   : > { %2707 = shalt.err (!%p2704_p6)
}
  0x4c   : > { %s3544_s8 = smov 8   ;;  %s3545_s11 = smov 128  }
  0x4d   : > { %2511 = dma.hbm_to_vmem [thread:$0]  (!%p2894_p8), %s2955_s14, 2048, %s2958_s1, %s2968_s24, %s3545_s11, %s3545_s11, %s3544_s8  }
  0x4e   : > { %s387_s17 = scalar_lea.vmem [#allocation6], %s2889_s28  ;;  %s2708_s13 = scalar_lea.hbm %s2964_s20, 2048 }
  0x4f   : > { %s394_s12 = sshll.u32 %s387_s17, 4  ;;  %p2709_p10 = scmp.ne.s32.totalorder %s2964_s20, %s2708_s13  ;;  %s2996_s12 = int_to_ptr.vmem [resolvable:$true] %s394_s12 }
  0x50   : > { %s2713_s25 = scalar_lea.hbm %s3512_s2, 8192  ;;  %p2714_p13 = scmp.lt.u32.totalorder %s2964_s20, %s3512_s2 }
  0x51   : > { %p2711_p4 = pnand %p2709_p10, %p2916_p12  ;;  %p2715_p1 = scmp.lt.u32.totalorder %s2713_s25, %s2708_s13 }
  0x52   : > { %p2717_p7 = scmp.lt.u32.totalorder %s2708_s13, %s2964_s20 }
  0x53   : > { %p2712_p11 = pneg %p2711_p4  ;;  %p2716_p2 = por %p2715_p1, %p2714_p13 }
  0x55   : > { %p2718_p9 = por %p2717_p7, %p2716_p2 }
  0x57   : > { %p2719_p0 = pnand %p2718_p9, %p2712_p11 }
  0x59   : > { %2722 = shalt.err (!%p2719_p0)
}
  0x5a   : > { %s2723_s1 = scalar_lea.vmem %s2996_s12, 2048  ;;  %s2782_s28 = smov [#allocation6]  }
  0x5b   : > { %p2724_p3 = scmp.ne.s32.totalorder %s2996_s12, %s2723_s1  ;;  %s2728_s24 = sshll.u32 %s2782_s28, 4  ;;  %s2729_s24 = int_to_ptr.vmem [resolvable:$false] %s2728_s24 }
  0x5c   : > { %s2730_s14 = scalar_lea.vmem %s2729_s24, 4096  ;;  %p2731_p10 = scmp.lt.s32.totalorder %s2996_s12, %s2729_s24 }
  0x5d   : > { %p2726_p5 = pnand %p2724_p3, %p2916_p12  ;;  %p2732_p4 = scmp.lt.s32.totalorder %s2730_s14, %s2723_s1 }
  0x5f   : > { %p2727_p6 = pneg %p2726_p5  ;;  %p2733_p13 = por %p2732_p4, %p2731_p10 }
  0x61   : > { %p2734_p1 = pnand %p2733_p13, %p2727_p6 }
  0x63   : > { %2737 = shalt.err (!%p2734_p1)
}
  0x64   : > { %2517 = dma.hbm_to_vmem [thread:$0]  (!%p2894_p8), %s2964_s20, 2048, %s2996_s12, %s2910_s23, %s3545_s11, %s3545_s11, %s3544_s8  }
  0x65   : > { %p3546_p12 = scmp.ne.s32.totalorder %s3542_s16, 0 }
  0x66   : > { %s408_s27 = sand.u32 (!%p3546_p12), 1, %s2768_s18   ;;  %p3547_p11 = scmp.ne.s32.totalorder (!%p3546_p12), %s3536_s26, 0 }
  0x67   : > { %406 = sbr.rel (%p3546_p12) target bundleno = 1554 (0x612), region = 64  ;;  %s3026_s17 = sshll.u32 (!%p3546_p12), %s408_s27, 7 }
  0x68   : > { %s409_s13 = scalar_lea.sflag (!%p3546_p12), [#allocation3], %s408_s27  ;;  %s3029_s22 = scalar_lea.vmem (!%p3546_p12), [#allocation2], %s3026_s17 }
  0x6e   : > { %2755 = dma.done.wait (%p3547_p11), %s409_s13, 2048  }
  0x6f   : > { %2757 = vsyncadd (%p3547_p11), %s409_s13, 4294965248  ;;  %s417_s30 = sand.u32 1, %s2865_s21   ;;  %s3037_s16 = scalar_lea.vmem [#allocation4], %s3026_s17 }
  0x70   : > { %s418_s23 = scalar_lea.sflag [#allocation5], %s417_s30 }
  0x71   : > { %2759 = dma.done.wait (%p3547_p11), %s418_s23, 4096  }
  0x72   : > { %2761 = vsyncadd (%p3547_p11), %s418_s23, 4294963200  ;;  %v2556_v0 = vld [vmem:[%s3515_s5] sm:$0xff]   ;;  %v2557_v1 = vld [vmem:[%s3515_s5 + $0x8] sm:$0xff]   ;;  %s2783_s26 = smov 64   ;;  %s3548_s1 = sld [smem:[#allocation13_spill]]  ;;  %vm1186_vm0 = vcmask 523264  }
  0x73   : > { %2282 = vmatprep.subr.bf16.mxu1 %v2556_v0  ;;  %v2558_v2 = vld [vmem:[%s3515_s5 + $0x10] sm:$0xff]   ;;  %v2559_v3 = vld [vmem:[%s3515_s5 + $0x18] sm:$0xff]   ;;  %v509_v4 = vld [vmem:[%s3037_s16] sm:$0xff]  ;;  %vm2785_vm1 = vmmov 0   ;;  %s3549_s14 = sld [smem:[#allocation12_spill]]  ;;  %p479_p8 = scmp.lt.s32.totalorder %s2865_s21, 3 }
  0x74   : > { %2283 = vmatpush3.bf16.msra.mxu1 %v2556_v0  ;;  %v510_v5 = vld [vmem:[%s3037_s16 + $0x8] sm:$0xff]  ;;  %v2560_v7 = vld [vmem:[%s3515_s5 + $0x20] sm:$0xff]   ;;  %v2566_v11 = vld [vmem:[%s3513_s3 + $0x10] sm:$0xff]  }
  0x75   : > { %2284 = vmatprep.subr.bf16.mxu1 %v2557_v1  ;;  %v525_v6 = vpack.c.bf16 %v510_v5, %v509_v4  ;;  %v2564_v8 = vld [vmem:[%s3513_s3] sm:$0xff]   ;;  %v2565_v9 = vld [vmem:[%s3513_s3 + $0x8] sm:$0xff]   ;;  %v2562_v12 = vld [vmem:[%s3515_s5 + $0x30] sm:$0xff]   ;;  %s3557_s21 = smov (!%p479_p8, %s2865_s21), 3 }
  0x76   : > { %v2561_v10 = vld [vmem:[%s3515_s5 + $0x28] sm:$0xff]   ;;  %2250 = vmatprep.subr.bf16.mxu0 %v2564_v8  ;;  %v2567_v13 = vld [vmem:[%s3513_s3 + $0x18] sm:$0xff]   ;;  %v2568_v15 = vld [vmem:[%s3513_s3 + $0x20] sm:$0xff]   ;;  %s2120_s27 = sshll.u32 %s3557_s21, 6 }
  0x77   : > { %2298 = vmatprep.mubr.bf16.mxu1 %v525_v6  ;;  %2251 = vmatpush3.bf16.msra.mxu0 %v2564_v8  ;;  %v2563_v14 = vld [vmem:[%s3515_s5 + $0x38] sm:$0xff]   ;;  %v511_v16 = vld [vmem:[%s3037_s16 + $0x10] sm:$0xff]  ;;  %v513_v18 = vld [vmem:[%s3037_s16 + $0x20] sm:$0xff] }
  0x78   : > { %2285 = vmatpush3.bf16.msra.mxu1 %v2557_v1  ;;  %2252 = vmatprep.subr.bf16.mxu0 %v2565_v9  ;;  %v512_v17 = vld [vmem:[%s3037_s16 + $0x18] sm:$0xff]  ;;  %v514_v19 = vld [vmem:[%s3037_s16 + $0x28] sm:$0xff]  ;;  %v515_v23 = vld [vmem:[%s3037_s16 + $0x30] sm:$0xff] }
  0x79   : > { %2286 = vmatprep.subr.bf16.mxu1 %v2558_v2  ;;  %v526_v20 = vpack.c.bf16 %v512_v17, %v511_v16  ;;  %v2569_v21 = vld [vmem:[%s3513_s3 + $0x28] sm:$0xff]   ;;  %v527_v22 = vpack.c.bf16 %v514_v19, %v513_v18  ;;  %v516_v24 = vld [vmem:[%s3037_s16 + $0x38] sm:$0xff]  ;;  %v517_v25 = vld [vmem:[%s3037_s16 + $0x40] sm:$0xff] }
  0x7a   : > { %v518_v26 = vld [vmem:[%s3037_s16 + $0x48] sm:$0xff]  ;;  %v528_v27 = vpack.c.bf16 %v516_v24, %v515_v23  ;;  %v519_v29 = vld [vmem:[%s3037_s16 + $0x50] sm:$0xff]  ;;  %v520_v30 = vld [vmem:[%s3037_s16 + $0x58] sm:$0xff] }
  0x7b   : > { %2253 = vmatpush3.bf16.msra.mxu0 %v2565_v9  ;;  %v529_v28 = vpack.c.bf16 %v518_v26, %v517_v25  ;;  %v521_v31 = vld [vmem:[%s3037_s16 + $0x60] sm:$0xff]  ;;  %v522_v32 = vld [vmem:[%s3037_s16 + $0x68] sm:$0xff]  ;;  %v530_v33 = vpack.c.bf16 %v520_v30, %v519_v29  ;;  %v523_v35 = vld [vmem:[%s3037_s16 + $0x70] sm:$0xff] }
  0x7c   : > { %2287 = vmatpush3.bf16.msra.mxu1 %v2558_v2  ;;  %2254 = vmatprep.subr.bf16.mxu0 %v2566_v11  ;;  %v531_v34 = vpack.c.bf16 %v522_v32, %v521_v31  ;;  %v524_v36 = vld [vmem:[%s3037_s16 + $0x78] sm:$0xff]  ;;  %v2570_v38 = vld [vmem:[%s3513_s3 + $0x30] sm:$0xff]   ;;  %v485_v40 = vld [vmem:[%s3029_s22] sm:$0xff]  ;;  %s3151_s16 = scalar_lea.vmem [#allocation6], %s3026_s17  ;;  %s3550_s17 = sld [smem:[#allocation14_spill]] }
  0x7d   : > { %2288 = vmatprep.subr.bf16.mxu1 %v2559_v3  ;;  %v532_v37 = vpack.c.bf16 %v524_v36, %v523_v35  ;;  %v2571_v39 = vld [vmem:[%s3513_s3 + $0x38] sm:$0xff]   ;;  %v486_v41 = vld [vmem:[%s3029_s22 + $0x8] sm:$0xff]  ;;  %v487_v43 = vld [vmem:[%s3029_s22 + $0x10] sm:$0xff] }
  0x7e   : > { %v501_v42 = vpack.c.bf16 %v486_v41, %v485_v40  ;;  %v488_v44 = vld [vmem:[%s3029_s22 + $0x18] sm:$0xff]  ;;  %v2572_v46 = vld [vmem:[%s3519_s9] sm:$0xff]   ;;  %v2573_v47 = vld [vmem:[%s3519_s9 + $0x8] sm:$0xff]  }
  0x7f   : > { %2255 = vmatpush3.bf16.msra.mxu0 %v2566_v11  ;;  %v502_v45 = vpack.c.bf16 %v488_v44, %v487_v43  ;;  %v489_v48 = vld [vmem:[%s3029_s22 + $0x20] sm:$0xff]  ;;  %v490_v49 = vld [vmem:[%s3029_s22 + $0x28] sm:$0xff]  ;;  %v491_v51 = vld [vmem:[%s3029_s22 + $0x30] sm:$0xff] }
  0x80   : > { %2289 = vmatpush3.bf16.msra.mxu1 %v2559_v3  ;;  %2256 = vmatprep.subr.bf16.mxu0 %v2567_v13  ;;  %v503_v50 = vpack.c.bf16 %v490_v49, %v489_v48  ;;  %v492_v52 = vld [vmem:[%s3029_s22 + $0x38] sm:$0xff]  ;;  %v2574_v54 = vld [vmem:[%s3519_s9 + $0x10] sm:$0xff]   ;;  %v493_v56 = vld [vmem:[%s3029_s22 + $0x40] sm:$0xff] }
  0x81   : > { %2290 = vmatprep.subr.bf16.mxu1 %v2560_v7  ;;  %2266 = vmatprep.mubr.bf16.mxu0 %v501_v42  ;;  %v504_v53 = vpack.c.bf16 %v492_v52, %v491_v51  ;;  %v2575_v55 = vld [vmem:[%s3519_s9 + $0x18] sm:$0xff]   ;;  %v494_v57 = vld [vmem:[%s3029_s22 + $0x48] sm:$0xff]  ;;  %v495_v59 = vld [vmem:[%s3029_s22 + $0x50] sm:$0xff] }
  0x82   : > { %v505_v58 = vpack.c.bf16 %v494_v57, %v493_v56  ;;  %v496_v60 = vld [vmem:[%s3029_s22 + $0x58] sm:$0xff]  ;;  %v2576_v62 = vld [vmem:[%s3519_s9 + $0x20] sm:$0xff]   ;;  %v2577_v63 = vld [vmem:[%s3519_s9 + $0x28] sm:$0xff]  }
  0x83   : > { %2257 = vmatpush3.bf16.msra.mxu0 %v2567_v13  ;;  %v506_v61 = vpack.c.bf16 %v496_v60, %v495_v59  ;;  %v497_v0 = vld [vmem:[%s3029_s22 + $0x60] sm:$0xff]  ;;  %v498_v1 = vld [vmem:[%s3029_s22 + $0x68] sm:$0xff]  ;;  %v499_v3 = vld [vmem:[%s3029_s22 + $0x70] sm:$0xff] }
  0x84   : > { %2291 = vmatpush3.bf16.msra.mxu1 %v2560_v7  ;;  %2258 = vmatprep.subr.bf16.mxu0 %v2568_v15  ;;  %v507_v2 = vpack.c.bf16 %v498_v1, %v497_v0  ;;  %v500_v4 = vld [vmem:[%s3029_s22 + $0x78] sm:$0xff]  ;;  %v2578_v6 = vld [vmem:[%s3519_s9 + $0x30] sm:$0xff]   ;;  %v2580_v8 = vld [vmem:[%s3517_s7] sm:$0xff]   ;;  %s3462_s22 = scalar_lea.vmem %s3550_s17, %s2120_s27 }
  0x85   : > { %2292 = vmatprep.subr.bf16.mxu1 %v2561_v10  ;;  %v508_v5 = vpack.c.bf16 %v500_v4, %v499_v3  ;;  %v2579_v7 = vld [vmem:[%s3519_s9 + $0x38] sm:$0xff]   ;;  %v533_v9 = vld [vmem:[%s3151_s16] sm:$0xff]  ;;  %v538_v16 = vld [vmem:[%s3151_s16 + $0x28] sm:$0xff] }
  0x86   : > { %v536_v13 = vld [vmem:[%s3151_s16 + $0x18] sm:$0xff]  ;;  %v539_v17 = vld [vmem:[%s3151_s16 + $0x30] sm:$0xff]  ;;  %v545_v26 = vld [vmem:[%s3151_s16 + $0x60] sm:$0xff] }
  0x87   : > { %2259 = vmatpush3.bf16.msra.mxu0 %v2568_v15  ;;  %v537_v15 = vld [vmem:[%s3151_s16 + $0x20] sm:$0xff]  ;;  %v540_v19 = vld [vmem:[%s3151_s16 + $0x38] sm:$0xff]  ;;  %v543_v24 = vld [vmem:[%s3151_s16 + $0x50] sm:$0xff] }
  0x88   : > { %2293 = vmatpush3.bf16.msra.mxu1 %v2561_v10  ;;  %2260 = vmatprep.subr.bf16.mxu0 %v2569_v21  ;;  %v534_v10 = vld [vmem:[%s3151_s16 + $0x8] sm:$0xff]  ;;  %v551_v18 = vpack.c.bf16 %v538_v16, %v537_v15  ;;  %v544_v25 = vld [vmem:[%s3151_s16 + $0x58] sm:$0xff]  ;;  %v547_v30 = vld [vmem:[%s3151_s16 + $0x70] sm:$0xff] }
  0x89   : > { %2294 = vmatprep.subr.bf16.mxu1 %v2562_v12  ;;  %v549_v11 = vpack.c.bf16 %v534_v10, %v533_v9  ;;  %v548_v31 = vld [vmem:[%s3151_s16 + $0x78] sm:$0xff]  ;;  %v2581_v10 = vld [vmem:[%s3517_s7 + $0x8] sm:$0xff]  }
  0x8a   : > { %v556_v32 = vpack.c.bf16 %v548_v31, %v547_v30 }
  0x8b   : > { %2261 = vmatpush3.bf16.msra.mxu0 %v2569_v21  ;;  %v542_v21 = vld [vmem:[%s3151_s16 + $0x48] sm:$0xff] }
  0x8c   : > { %2295 = vmatpush3.bf16.msra.mxu1 %v2562_v12  ;;  %2262 = vmatprep.subr.bf16.mxu0 %v2570_v38  ;;  %v535_v12 = vld [vmem:[%s3151_s16 + $0x10] sm:$0xff] }
  0x8d   : > { %2296 = vmatprep.subr.bf16.mxu1 %v2563_v14 }
  0x8f   : > { %2263 = vmatpush3.bf16.msra.mxu0 %v2570_v38 }
  0x90   : > { %2297 = vmatpush3.bf16.msra.mxu1 %v2563_v14  ;;  %2264 = vmatprep.subr.bf16.mxu0 %v2571_v39  ;;  %v550_v14 = vpack.c.bf16 %v536_v13, %v535_v12  ;;  %v2583_v12 = vld [vmem:[%s3517_s7 + $0x18] sm:$0xff]   ;;  %v2051_v13 = vld [vmem:[%s3514_s4] ss:$0 sm:$0xff] }
  0x93   : > { %2299 = vmatmul.mubr.bf16.vlgmr.msra.gmra.mrb[0].mxu1 %v526_v20  ;;  %2265 = vmatpush3.bf16.msra.mxu0 %v2571_v39  ;;  %v541_v20 = vld [vmem:[%s3151_s16 + $0x40] sm:$0xff] }
  0x94   : > { %2302 = vmatprep.mubr.bf16.mxu1 %v527_v22  ;;  %2314 = vmatprep.subr.bf16.mxu0 %v2572_v46  ;;  %v552_v22 = vpack.c.bf16 %v540_v19, %v539_v17  ;;  %v553_v23 = vpack.c.bf16 %v542_v21, %v541_v20 }
  0x96   : > { %2267 = vmatmul.mubr.bf16.vlgmr.msra.gmra.mrb[0].mxu0 %v502_v45 }
  0x97   : > { %2315 = vmatpush3.bf16.msra.mxu0 %v2572_v46  ;;  %2270 = vmatprep.mubr.bf16.mxu0 %v503_v50 }
  0x98   : > { %2316 = vmatprep.subr.bf16.mxu0 %v2573_v47 }
  0x9b   : > { %2303 = vmatmul.mubr.bf16.gmra.mrb[4].mxu1 %v528_v27  ;;  %2317 = vmatpush3.bf16.msra.mxu0 %v2573_v47  ;;  %v546_v27 = vld [vmem:[%s3151_s16 + $0x68] sm:$0xff] }
  0x9c   : > { %2306 = vmatprep.mubr.bf16.mxu1 %v529_v28  ;;  %2318 = vmatprep.subr.bf16.mxu0 %v2574_v54  ;;  %v554_v28 = vpack.c.bf16 %v544_v25, %v543_v24  ;;  %v555_v29 = vpack.c.bf16 %v546_v27, %v545_v26 }
  0x9e   : > { %2271 = vmatmul.mubr.bf16.gmra.mrb[4].mxu0 %v504_v53 }
  0x9f   : > { %2319 = vmatpush3.bf16.msra.mxu0 %v2574_v54  ;;  %2274 = vmatprep.mubr.bf16.mxu0 %v505_v58 }
  0xa0   : > { %2320 = vmatprep.subr.bf16.mxu0 %v2575_v55 }
  0xa3   : > { %2307 = vmatmul.mubr.bf16.gmra.mrb[8].mxu1 %v530_v33  ;;  %2321 = vmatpush3.bf16.msra.mxu0 %v2575_v55 }
  0xa4   : > { %2310 = vmatprep.mubr.bf16.mxu1 %v531_v34  ;;  %2322 = vmatprep.subr.bf16.mxu0 %v2576_v62  ;;  %v2060_v34 = vld [vmem:[%s3516_s6] ss:$0 sm:$0xff] }
  0xa6   : > { %2275 = vmatmul.mubr.bf16.gmra.mrb[8].mxu0 %v506_v61 }
  0xa7   : > { %2323 = vmatpush3.bf16.msra.mxu0 %v2576_v62  ;;  %2278 = vmatprep.mubr.bf16.mxu0 %v507_v2 }
  0xa8   : > { %2324 = vmatprep.subr.bf16.mxu0 %v2577_v63 }
  0xab   : > { %2311 = vmatmul.mubr.bf16.gmra.mrb[12].mxu1 %v532_v37  ;;  %2325 = vmatpush3.bf16.msra.mxu0 %v2577_v63 }
  0xac   : > { %2326 = vmatprep.subr.bf16.mxu0 %v2578_v6  ;;  %2362 = vmatprep.mubr.bf16.mxu1 %v2580_v8 }
  0xae   : > { %2279 = vmatmul.mubr.bf16.gmra.mrb[12].mxu0 %v508_v5 }
  0xaf   : > { %2327 = vmatpush3.bf16.msra.mxu0 %v2578_v6  ;;  %2330 = vmatprep.mubr.bf16.mxu0 %v549_v11  ;;  %v2582_v11 = vld [vmem:[%s3517_s7 + $0x10] sm:$0xff]  }
  0xb0   : > { %2328 = vmatprep.subr.bf16.mxu0 %v2579_v7 }
  0xb3   : > { %2329 = vmatpush3.bf16.msra.mxu0 %v2579_v7 }
  0xb6   : > { %2331 = vmatmul.mubr.bf16.vlgmr.msra.gmra.mrb[16].mxu0 %v550_v14 }
  0xb7   : > { %2334 = vmatprep.mubr.bf16.mxu0 %v551_v18 }
  0xbe   : > { %2335 = vmatmul.mubr.bf16.gmra.mrb[20].mxu0 %v552_v22 }
  0xbf   : > { %2338 = vmatprep.mubr.bf16.mxu0 %v553_v23 }
  0xc6   : > { %2339 = vmatmul.mubr.bf16.gmra.mrb[24].mxu0 %v554_v28 }
  0xc7   : > { %2342 = vmatprep.mubr.bf16.mxu0 %v555_v29 }
  0xce   : > { %2343 = vmatmul.mubr.bf16.gmra.mrb[28].mxu0 %v556_v32 }
 0x166   : > { %v2300_v33 = vpop.f32.mrb[0].mxu1 }
 0x167   : > { %v830_v35 = vpop.f32.mrb[1].mxu1  ;;  %v839_v37 = vadd.f32 %v2300_v33, %v2060_v34 }
 0x168   : > { %v2301_v36 = vpop.f32.mrb[2].mxu1  ;;  %v831_v40 = vadd.f32 %v2060_v34, %v830_v35 }
 0x169   : > { %v842_v38 = vadd.f32 %v2301_v36, %v2060_v34  ;;  %v833_v39 = vpop.f32.mrb[3].mxu1  ;;  %v2268_v14 = vpop.f32.mrb[0].mxu0 }
 0x16a   : > { %v834_v41 = vadd.f32 %v2060_v34, %v833_v39  ;;  %v671_v15 = vadd.f32 %v2268_v14, %v2051_v13  ;;  %v662_v16 = vpop.f32.mrb[1].mxu0 }
 0x16b   : > { %v1070_v42 = vpack.c.bf16 %v842_v38, %v839_v37  ;;  %v663_v17 = vadd.f32 %v2051_v13, %v662_v16  ;;  %v2269_v18 = vpop.f32.mrb[2].mxu0 }
 0x16c   : > { %v1069_v43 = vpack.c.bf16 %v834_v41, %v831_v40  ;;  %v674_v19 = vadd.f32 %v2269_v18, %v2051_v13  ;;  %v665_v20 = vpop.f32.mrb[3].mxu0 }
 0x16d   : > { %v666_v21 = vadd.f32 %v2051_v13, %v665_v20 }
 0x16e   : > { %v2304_v44 = vpop.f32.mrb[4].mxu1  ;;  %2346 = vmatprep.subr.bf16.mxu1 %v1069_v43  ;;  %v3184_v22 = vpack.c.bf16 %v674_v19, %v671_v15 }
 0x16f   : > { %v846_v45 = vpop.f32.mrb[5].mxu1  ;;  %2347 = vmatpush3.bf16.msra.mxu1 %v1069_v43  ;;  %v855_v47 = vadd.f32 %v2304_v44, %v2060_v34  ;;  %v3186_v23 = vpack.c.bf16 %v666_v21, %v663_v17 }
 0x170   : > { %v2305_v46 = vpop.f32.mrb[6].mxu1  ;;  %2348 = vmatprep.subr.bf16.mxu1 %v1070_v42  ;;  %v847_v50 = vadd.f32 %v2060_v34, %v846_v45  ;;  %1691 = vrot.lane.b32.xlu0 %v3184_v22, %s2783_s26 }
 0x171   : > { %v858_v48 = vadd.f32 %v2305_v46, %v2060_v34  ;;  %v849_v49 = vpop.f32.mrb[7].mxu1  ;;  %v2272_v24 = vpop.f32.mrb[4].mxu0  ;;  %1689 = vrot.lane.b32.xlu1 %v3186_v23, %s2783_s26 }
 0x172   : > { %v850_v51 = vadd.f32 %v2060_v34, %v849_v49  ;;  %v687_v25 = vadd.f32 %v2272_v24, %v2051_v13  ;;  %v678_v26 = vpop.f32.mrb[5].mxu0 }
 0x173   : > { %v1072_v52 = vpack.c.bf16 %v858_v48, %v855_v47  ;;  %2349 = vmatpush3.bf16.msra.mxu1 %v1070_v42  ;;  %v679_v27 = vadd.f32 %v2051_v13, %v678_v26  ;;  %v2273_v28 = vpop.f32.mrb[6].mxu0 }
 0x174   : > { %v1071_v53 = vpack.c.bf16 %v850_v51, %v847_v50  ;;  %v690_v29 = vadd.f32 %v2273_v28, %v2051_v13  ;;  %v681_v30 = vpop.f32.mrb[7].mxu0 }
 0x175   : > { %v682_v31 = vadd.f32 %v2051_v13, %v681_v30 }
 0x176   : > { %v2308_v54 = vpop.f32.mrb[8].mxu1  ;;  %2350 = vmatprep.subr.bf16.mxu1 %v1071_v53  ;;  %v3192_v32 = vpack.c.bf16 %v690_v29, %v687_v25 }
 0x177   : > { %v862_v55 = vpop.f32.mrb[9].mxu1  ;;  %2351 = vmatpush3.bf16.msra.mxu1 %v1071_v53  ;;  %v871_v57 = vadd.f32 %v2308_v54, %v2060_v34  ;;  %v3194_v33 = vpack.c.bf16 %v682_v31, %v679_v27  ;;  %v2069_v54 = vld [vmem:[%s3548_s1] ss:$0 sm:$0xff] }
 0x178   : > { %v2309_v56 = vpop.f32.mrb[10].mxu1  ;;  %2352 = vmatprep.subr.bf16.mxu1 %v1072_v52  ;;  %v863_v60 = vadd.f32 %v2060_v34, %v862_v55  ;;  %1695 = vrot.lane.b32.xlu0 %v3192_v32, %s2783_s26 }
 0x179   : > { %v874_v58 = vadd.f32 %v2309_v56, %v2060_v34  ;;  %v865_v59 = vpop.f32.mrb[11].mxu1  ;;  %1693 = vrot.lane.b32.xlu1 %v3194_v33, %s2783_s26 }
 0x17a   : > { %v866_v61 = vadd.f32 %v2060_v34, %v865_v59 }
 0x17b   : > { %v1074_v62 = vpack.c.bf16 %v874_v58, %v871_v57  ;;  %2353 = vmatpush3.bf16.msra.mxu1 %v1072_v52 }
 0x17c   : > { %v1073_v63 = vpack.c.bf16 %v866_v61, %v863_v60 }
 0x17e   : > { %v2312_v0 = vpop.f32.mrb[12].mxu1  ;;  %2354 = vmatprep.subr.bf16.mxu1 %v1073_v63 }
 0x17f   : > { %v878_v1 = vpop.f32.mrb[13].mxu1  ;;  %2355 = vmatpush3.bf16.msra.mxu1 %v1073_v63  ;;  %v887_v3 = vadd.f32 %v2312_v0, %v2060_v34 }
 0x180   : > { %v2313_v2 = vpop.f32.mrb[14].mxu1  ;;  %2356 = vmatprep.subr.bf16.mxu1 %v1074_v62  ;;  %v879_v6 = vadd.f32 %v2060_v34, %v878_v1  ;;  %v2784_v1 = vmov 0.0  }
 0x181   : > { %v890_v4 = vadd.f32 %v2313_v2, %v2060_v34  ;;  %v881_v5 = vpop.f32.mrb[15].mxu1  ;;  %2394 = vmatprep.subr.bf16.mxu0 %v2784_v1  ;;  %2410 = vmatprep.mubr.msk.bf16.mxu0 %vm2785_vm1, %v2784_v1 }
 0x182   : > { %v882_v7 = vadd.f32 %v2060_v34, %v881_v5  ;;  %v2276_v34 = vpop.f32.mrb[8].mxu0 }
 0x183   : > { %v1076_v8 = vpack.c.bf16 %v890_v4, %v887_v3  ;;  %2357 = vmatpush3.bf16.msra.mxu1 %v1074_v62  ;;  %v703_v35 = vadd.f32 %v2276_v34, %v2051_v13  ;;  %v694_v36 = vpop.f32.mrb[9].mxu0 }
 0x184   : > { %v1075_v9 = vpack.c.bf16 %v882_v7, %v879_v6  ;;  %v695_v37 = vadd.f32 %v2051_v13, %v694_v36  ;;  %v2277_v38 = vpop.f32.mrb[10].mxu0 }
 0x185   : > { %v706_v39 = vadd.f32 %v2277_v38, %v2051_v13  ;;  %v697_v40 = vpop.f32.mrb[11].mxu0 }
 0x186   : > { %2358 = vmatprep.subr.bf16.mxu1 %v1075_v9  ;;  %v698_v41 = vadd.f32 %v2051_v13, %v697_v40  ;;  %v2280_v44 = vpop.f32.mrb[12].mxu0 }
 0x187   : > { %2359 = vmatpush3.bf16.msra.mxu1 %v1075_v9  ;;  %v3200_v42 = vpack.c.bf16 %v706_v39, %v703_v35  ;;  %v719_v45 = vadd.f32 %v2280_v44, %v2051_v13  ;;  %v710_v46 = vpop.f32.mrb[13].mxu0 }
 0x188   : > { %2360 = vmatprep.subr.bf16.mxu1 %v1076_v8  ;;  %v3202_v43 = vpack.c.bf16 %v698_v41, %v695_v37  ;;  %v711_v47 = vadd.f32 %v2051_v13, %v710_v46  ;;  %v2281_v48 = vpop.f32.mrb[14].mxu0  ;;  %v1316_v46 = vld [vmem:[%s3549_s14] sm:$0xff] }
 0x189   : > { %v722_v49 = vadd.f32 %v2281_v48, %v2051_v13  ;;  %v713_v50 = vpop.f32.mrb[15].mxu0 }
 0x18a   : > { %1697 = vrot.lane.b32.xlu1 %v3202_v43, %s2783_s26  ;;  %v714_v51 = vadd.f32 %v2051_v13, %v713_v50  ;;  %v2332_v52 = vpop.f32.mrb[16].mxu0 }
 0x18b   : > { %2361 = vmatpush3.bf16.msra.mxu1 %v1076_v8  ;;  %v3206_v53 = vpack.c.bf16 %v722_v49, %v719_v45  ;;  %v998_v55 = vpop.f32.mrb[17].mxu0  ;;  %v1007_v57 = vadd.f32 %v2332_v52, %v2069_v54 }
 0x18c   : > { %v3211_v56 = vpack.c.bf16 %v714_v51, %v711_v47  ;;  %v999_v58 = vadd.f32 %v2069_v54, %v998_v55  ;;  %v2333_v59 = vpop.f32.mrb[18].mxu0  ;;  %v1317_v47 = vpack.c.bf16 %v1316_v46, %v1316_v46 }
 0x18d   : > { %v1010_v60 = vadd.f32 %v2333_v59, %v2069_v54  ;;  %v1001_v61 = vpop.f32.mrb[19].mxu0 }
 0x18e   : > { %2363 = vmatmul.mubr.bf16.vlgmr.msra.gmra.mrb[16].mxu1 %v2581_v10  ;;  %v1002_v62 = vadd.f32 %v2069_v54, %v1001_v61 }
 0x18f   : > { %2366 = vmatprep.mubr.bf16.mxu1 %v2582_v11  ;;  %v3213_v63 = vpack.c.bf16 %v1010_v60, %v1007_v57 }
 0x190   : > { %v1077_v0 = vpack.c.bf16 %v1002_v62, %v999_v58 }
 0x191   : > { %v2336_v3 = vpop.f32.mrb[20].mxu0  ;;  %v1191_v4 = vsel %vm1186_vm0, %v3213_v63, 0 }
 0x192   : > { %v1188_v2 = vsel %vm1186_vm0, %v1077_v0, 0  ;;  %v1023_v5 = vadd.f32 %v2336_v3, %v2069_v54  ;;  %v1014_v6 = vpop.f32.mrb[21].mxu0 }
 0x193   : > { %2395 = vmatpush3.bf16.xpose.msra.mxu0 %v1188_v2  ;;  %v1015_v7 = vadd.f32 %v2069_v54, %v1014_v6  ;;  %v2337_v8 = vpop.f32.mrb[22].mxu0 }
 0x194   : > { %2396 = vmatprep.subr.bf16.mxu0 %v2784_v1  ;;  %v1026_v9 = vadd.f32 %v2337_v8, %v2069_v54  ;;  %v1017_v10 = vpop.f32.mrb[23].mxu0 }
 0x195   : > { %v1018_v11 = vadd.f32 %v2069_v54, %v1017_v10 }
 0x196   : > { %2367 = vmatmul.mubr.bf16.gmra.mrb[20].mxu1 %v2583_v12  ;;  %v3219_v13 = vpack.c.bf16 %v1026_v9, %v1023_v5 }
 0x197   : > { %2378 = vmatprep.mubr.msk.bf16.mxu1 %vm1186_vm0, %v1077_v0  ;;  %v3221_v15 = vpack.c.bf16 %v1018_v11, %v1015_v7 }
 0x198   : > { %v1197_v25 = vsel %vm1186_vm0, %v3219_v13, 0 }
 0x199   : > { %v2340_v12 = vpop.f32.mrb[24].mxu0  ;;  %v1194_v16 = vsel %vm1186_vm0, %v3221_v15, 0 }
 0x19a   : > { %v1030_v14 = vpop.f32.mrb[25].mxu0  ;;  %v1039_v17 = vadd.f32 %v2340_v12, %v2069_v54 }
 0x19b   : > { %2397 = vmatpush3.bf16.xpose.msra.mxu0 %v1191_v4  ;;  %v1031_v18 = vadd.f32 %v2069_v54, %v1030_v14  ;;  %v2341_v19 = vpop.f32.mrb[26].mxu0 }
 0x19c   : > { %2398 = vmatprep.subr.bf16.mxu0 %v2784_v1  ;;  %v1042_v20 = vadd.f32 %v2341_v19, %v2069_v54  ;;  %v1033_v21 = vpop.f32.mrb[27].mxu0 }
 0x19d   : > { %v1034_v24 = vadd.f32 %v2069_v54, %v1033_v21 }
 0x19e   : > { %v3227_v27 = vpack.c.bf16 %v1042_v20, %v1039_v17 }
 0x19f   : > { %v3229_v29 = vpack.c.bf16 %v1034_v24, %v1031_v18 }
 0x1a0   : > { %v1203_v41 = vsel %vm1186_vm0, %v3227_v27, 0 }
 0x1a1   : > { %v2344_v26 = vpop.f32.mrb[28].mxu0  ;;  %v1200_v38 = vsel %vm1186_vm0, %v3229_v29, 0 }
 0x1a2   : > { %v1046_v28 = vpop.f32.mrb[29].mxu0  ;;  %v1055_v30 = vadd.f32 %v2344_v26, %v2069_v54 }
 0x1a3   : > { %2399 = vmatpush3.bf16.xpose.msra.mxu0 %v1194_v16  ;;  %v1047_v31 = vadd.f32 %v2069_v54, %v1046_v28  ;;  %v2345_v34 = vpop.f32.mrb[30].mxu0 }
 0x1a4   : > { %2400 = vmatprep.subr.bf16.mxu0 %v2784_v1  ;;  %v1058_v35 = vadd.f32 %v2345_v34, %v2069_v54  ;;  %v1049_v36 = vpop.f32.mrb[31].mxu0 }
 0x1a5   : > { %v1050_v37 = vadd.f32 %v2069_v54, %v1049_v36 }
 0x1a6   : > { %v1084_v39 = vpack.c.bf16 %v1058_v35, %v1055_v30 }
 0x1a7   : > { %v1083_v40 = vpack.c.bf16 %v1050_v37, %v1047_v31 }
 0x1a8   : > { %v1209_v45 = vsel %vm1186_vm0, %v1084_v39, 0 }
 0x1a9   : > { %v1206_v44 = vsel %vm1186_vm0, %v1083_v40, 0 }
 0x1ab   : > { %2401 = vmatpush3.bf16.xpose.msra.mxu0 %v1197_v25 }
 0x1ac   : > { %2402 = vmatprep.subr.bf16.mxu0 %v2784_v1 }
 0x1b3   : > { %2403 = vmatpush3.bf16.xpose.msra.mxu0 %v1200_v38 }
 0x1b4   : > { %2404 = vmatprep.subr.bf16.mxu0 %v2784_v1 }
 0x1bb   : > { %2405 = vmatpush3.bf16.xpose.msra.mxu0 %v1203_v41 }
 0x1bc   : > { %2406 = vmatprep.subr.bf16.mxu0 %v2784_v1 }
 0x1c3   : > { %2407 = vmatpush3.bf16.xpose.msra.mxu0 %v1206_v44 }
 0x1c4   : > { %2408 = vmatprep.subr.bf16.mxu0 %v2784_v1 }
 0x1cb   : > { %2409 = vmatpush3.bf16.xpose.msra.mxu0 %v1209_v45 }
 0x1d2   : > { %2411 = vmatmul.mubr.msk.bf16.vlgmr.msra.gmra.mrb[32].mxu0 %vm1186_vm0, %v1317_v47 }
 0x1e2   : > { %v3243_v49 = vpop.permute.xlu0 %1691 }
 0x1e3   : > { %v3241_v48 = vpop.permute.xlu1 %1689 }
 0x1e4   : > { %2446 = vmatprep.subr.bf16.mxu0 %v3241_v48 }
 0x1e5   : > { %2447 = vmatpush3.bf16.msra.mxu0 %v3241_v48 }
 0x1e6   : > { %2448 = vmatprep.subr.bf16.mxu0 %v3243_v49 }
 0x1e9   : > { %2449 = vmatpush3.bf16.msra.mxu0 %v3243_v49 }
 0x1ea   : > { %v3251_v51 = vpop.permute.xlu0 %1695 }
 0x1eb   : > { %v3249_v50 = vpop.permute.xlu1 %1693 }
 0x1ec   : > { %2450 = vmatprep.subr.bf16.mxu0 %v3249_v50 }
 0x1ed   : > { %2451 = vmatpush3.bf16.msra.mxu0 %v3249_v50 }
 0x1ee   : > { %2452 = vmatprep.subr.bf16.mxu0 %v3251_v51 }
 0x1f1   : > { %2453 = vmatpush3.bf16.msra.mxu0 %v3251_v51 }
 0x1fc   : > { %v3257_v52 = vpop.permute.xlu1 %1697 }
 0x1fd   : > { %2454 = vmatprep.subr.bf16.mxu0 %v3257_v52 }
 0x1fe   : > { %2455 = vmatpush3.bf16.msra.mxu0 %v3257_v52 }
 0x261   : > { %v2364_v54 = vpop.f32.mrb[16].mxu1 }
 0x262   : > { %v1151_v55 = vpop.f32.mrb[17].mxu1 }
 0x263   : > { %v2365_v57 = vpop.f32.mrb[18].mxu1 }
 0x264   : > { %v1183_v58 = vpack.c.bf16 %v2365_v57, %v2364_v54  ;;  %v1154_v59 = vpop.f32.mrb[19].mxu1 }
 0x265   : > { %v1182_v60 = vpack.c.bf16 %v1154_v59, %v1151_v55 }
 0x267   : > { %2370 = vmatprep.subr.bf16.mxu1 %v1182_v60 }
 0x268   : > { %2371 = vmatpush3.bf16.msra.mxu1 %v1182_v60 }
 0x269   : > { %v2368_v61 = vpop.f32.mrb[20].mxu1  ;;  %2372 = vmatprep.subr.bf16.mxu1 %v1183_v58 }
 0x26a   : > { %v1167_v62 = vpop.f32.mrb[21].mxu1 }
 0x26b   : > { %v2369_v0 = vpop.f32.mrb[22].mxu1 }
 0x26c   : > { %v1185_v1 = vpack.c.bf16 %v2369_v0, %v2368_v61  ;;  %v1170_v2 = vpop.f32.mrb[23].mxu1  ;;  %2373 = vmatpush3.bf16.msra.mxu1 %v1183_v58 }
 0x26d   : > { %v1184_v3 = vpack.c.bf16 %v1170_v2, %v1167_v62 }
 0x26f   : > { %2374 = vmatprep.subr.bf16.mxu1 %v1184_v3 }
 0x270   : > { %2375 = vmatpush3.bf16.msra.mxu1 %v1184_v3 }
 0x271   : > { %2376 = vmatprep.subr.bf16.mxu1 %v1185_v1 }
 0x274   : > { %2377 = vmatpush3.bf16.msra.mxu1 %v1185_v1 }
 0x277   : > { %2379 = vmatmul.mubr.msk.bf16.vlgmr.msra.gmra.mrb[24].mxu1 %vm1186_vm0, %v3213_v63 }
 0x278   : > { %2382 = vmatprep.mubr.msk.bf16.mxu1 %vm1186_vm0, %v3221_v15 }
 0x27f   : > { %2383 = vmatmul.mubr.msk.bf16.gmra.mrb[28].mxu1 %vm1186_vm0, %v3219_v13 }
 0x280   : > { %2386 = vmatprep.mubr.msk.bf16.mxu1 %vm1186_vm0, %v3229_v29 }
 0x287   : > { %2387 = vmatmul.mubr.msk.bf16.gmra.mrb[32].mxu1 %vm1186_vm0, %v3227_v27 }
 0x288   : > { %2390 = vmatprep.mubr.msk.bf16.mxu1 %vm1186_vm0, %v1083_v40 }
 0x28f   : > { %2391 = vmatmul.mubr.msk.bf16.gmra.mrb[36].mxu1 %vm1186_vm0, %v1084_v39 }
 0x290   : > { %2430 = vmatprep.mubr.msk.bf16.mxu1 %vm1186_vm0, %v3186_v23 }
 0x2a5   : > { %v3275_v63 = vpop.f32.mrb[32].mxu0 }
 0x2a6   : > { %v2412_v4 = vpop.f32.mrb[33].mxu0 }
 0x2a7   : > { %v1358_v5 = vpop.f32.mrb[34].mxu0 }
 0x2a8   : > { %v2413_v6 = vpop.f32.mrb[35].mxu0 }
 0x34a   : > { %v2380_v7 = vpop.f32.mrb[24].mxu1 }
 0x34b   : > { %v1245_v8 = vpop.f32.mrb[25].mxu1 }
 0x34c   : > { %v2381_v9 = vpop.f32.mrb[26].mxu1 }
 0x34d   : > { %v1309_v10 = vpack.c.bf16 %v2381_v9, %v2380_v7  ;;  %v1248_v11 = vpop.f32.mrb[27].mxu1 }
 0x34e   : > { %v1308_v12 = vpack.c.bf16 %v1248_v11, %v1245_v8 }
 0x34f   : > { %v1393_v19 = vsel %vm1186_vm0, %v1309_v10, 0 }
 0x350   : > { %v1390_v13 = vsel %vm1186_vm0, %v1308_v12, 0  ;;  %2494 = vmatprep.subr.msk.bf16.mxu1 %vm1186_vm0, %v1308_v12 }
 0x351   : > { %2415 = vmatpush3.bf16.xpose.msra.mxu1 %v1390_v13 }
 0x352   : > { %2495 = vmatprep.subr.msk.bf16.mxu1 %vm1186_vm0, %v1309_v10  ;;  %v2384_v14 = vpop.f32.mrb[28].mxu1 }
 0x353   : > { %v1261_v23 = vpop.f32.mrb[29].mxu1 }
 0x354   : > { %v2385_v15 = vpop.f32.mrb[30].mxu1 }
 0x355   : > { %v1311_v16 = vpack.c.bf16 %v2385_v15, %v2384_v14  ;;  %v1264_v17 = vpop.f32.mrb[31].mxu1 }
 0x356   : > { %v1310_v18 = vpack.c.bf16 %v1264_v17, %v1261_v23 }
 0x357   : > { %v1399_v37 = vsel %vm1186_vm0, %v1311_v16, 0 }
 0x358   : > { %v1396_v28 = vsel %vm1186_vm0, %v1310_v18, 0 }
 0x359   : > { %2417 = vmatpush3.bf16.xpose.msra.mxu1 %v1393_v19 }
 0x35a   : > { %2496 = vmatprep.subr.msk.bf16.mxu1 %vm1186_vm0, %v1310_v18  ;;  %v2388_v20 = vpop.f32.mrb[32].mxu1 }
 0x35b   : > { %v1277_v21 = vpop.f32.mrb[33].mxu1 }
 0x35c   : > { %v2389_v24 = vpop.f32.mrb[34].mxu1 }
 0x35d   : > { %v1313_v25 = vpack.c.bf16 %v2389_v24, %v2388_v20  ;;  %v1280_v26 = vpop.f32.mrb[35].mxu1 }
 0x35e   : > { %v1312_v27 = vpack.c.bf16 %v1280_v26, %v1277_v21 }
 0x35f   : > { %v1405_v39 = vsel %vm1186_vm0, %v1313_v25, 0 }
 0x360   : > { %v1402_v38 = vsel %vm1186_vm0, %v1312_v27, 0 }
 0x361   : > { %2419 = vmatpush3.bf16.xpose.msra.mxu1 %v1396_v28 }
 0x362   : > { %2497 = vmatprep.subr.msk.bf16.mxu1 %vm1186_vm0, %v1311_v16  ;;  %v2392_v29 = vpop.f32.mrb[36].mxu1 }
 0x363   : > { %v1293_v30 = vpop.f32.mrb[37].mxu1 }
 0x364   : > { %v2393_v31 = vpop.f32.mrb[38].mxu1 }
 0x365   : > { %v1315_v34 = vpack.c.bf16 %v2393_v31, %v2392_v29  ;;  %v1296_v35 = vpop.f32.mrb[39].mxu1 }
 0x366   : > { %v1314_v36 = vpack.c.bf16 %v1296_v35, %v1293_v30 }
 0x367   : > { %v1411_v41 = vsel %vm1186_vm0, %v1315_v34, 0 }
 0x368   : > { %v1408_v40 = vsel %vm1186_vm0, %v1314_v36, 0 }
 0x369   : > { %2421 = vmatpush3.bf16.xpose.msra.mxu1 %v1399_v37 }
 0x36a   : > { %2498 = vmatprep.subr.msk.bf16.mxu1 %vm1186_vm0, %v1312_v27 }
 0x371   : > { %2423 = vmatpush3.bf16.xpose.msra.mxu1 %v1402_v38 }
 0x372   : > { %2499 = vmatprep.subr.msk.bf16.mxu1 %vm1186_vm0, %v1313_v25 }
 0x379   : > { %2425 = vmatpush3.bf16.xpose.msra.mxu1 %v1405_v39 }
 0x37a   : > { %2500 = vmatprep.subr.msk.bf16.mxu1 %vm1186_vm0, %v1314_v36 }
 0x381   : > { %2427 = vmatpush3.bf16.xpose.msra.mxu1 %v1408_v40 }
 0x382   : > { %2501 = vmatprep.subr.msk.bf16.mxu1 %vm1186_vm0, %v1315_v34 }
 0x389   : > { %2429 = vmatpush3.bf16.xpose.msra.mxu1 %v1411_v41 }
 0x38a   : > { %2478 = vmatprep.subr.bf16.mxu1 %v3241_v48 }
 0x390   : > { %2431 = vmatmul.mubr.msk.bf16.vlgmr.msra.gmra.mrb[40].mxu1 %vm1186_vm0, %v3184_v22  ;;  %v1361_v22 = vlaneseq }
 0x391   : > { %2434 = vmatprep.mubr.msk.bf16.mxu1 %vm1186_vm0, %v3194_v33  ;;  %2486 = vmatpush3.bf16.msra.mxu1 %v3241_v48 }
 0x392   : > { %2479 = vmatprep.subr.bf16.mxu1 %v3243_v49  ;;  %v3321_v44 = vand.u32 127, %v1361_v22 }
 0x395   : > { %2487 = vmatpush3.bf16.msra.mxu1 %v3243_v49 }
 0x396   : > { %2480 = vmatprep.subr.bf16.mxu1 %v3249_v50 }
 0x398   : > { %2435 = vmatmul.mubr.msk.bf16.gmra.mrb[44].mxu1 %vm1186_vm0, %v3192_v32  ;;  %v3317_v32 = vshrl.u32 %v1361_v22, 7 }
 0x399   : > { %2438 = vmatprep.mubr.msk.bf16.mxu1 %vm1186_vm0, %v3202_v43  ;;  %2488 = vmatpush3.bf16.msra.mxu1 %v3249_v50 }
 0x39a   : > { %2481 = vmatprep.subr.bf16.mxu1 %v3251_v51  ;;  %v1363_v33 = vsub.s32 0, %v3317_v32  ;;  %v1513_v43 = vadd.s32 16, %v3317_v32  ;;  %vm1529_vm3 = vcmp.le.s32.totalorder %v3321_v44, %v3317_v32  ;;  %v1514_v49 = vadd.s32 24, %v3317_v32 }
 0x39b   : > { %v1517_v59 = vadd.s32 48, %v3317_v32  ;;  %v1512_v60 = vadd.s32 8, %v3317_v32  ;;  %v1516_v61 = vadd.s32 40, %v3317_v32  ;;  %v1515_v3 = vadd.s32 32, %v3317_v32 }
 0x39c   : > { %v3324_v45 = vrot.slane %v3275_v63, %v1363_v33  ;;  %vm1531_vm2 = vcmp.le.s32.totalorder %v3321_v44, %v1513_v43  ;;  %vm1532_vm4 = vcmp.le.s32.totalorder %v3321_v44, %v1514_v49  ;;  %v1518_v10 = vadd.s32 56, %v3317_v32 }
 0x39d   : > { %2489 = vmatpush3.bf16.msra.mxu1 %v3251_v51  ;;  %vm1535_vm5 = vcmp.le.s32.totalorder %v3321_v44, %v1517_v59  ;;  %vm1530_vm6 = vcmp.le.s32.totalorder %v3321_v44, %v1512_v60  ;;  %vm1534_vm7 = vcmp.le.s32.totalorder %v3321_v44, %v1516_v61  ;;  %vm1533_vm8 = vcmp.le.s32.totalorder %v3321_v44, %v1515_v3 }
 0x39e   : > { %2482 = vmatprep.subr.bf16.mxu1 %v3257_v52  ;;  %v1520_v12 = vadd.s32 72, %v3317_v32  ;;  %vm1536_vm9 = vcmp.le.s32.totalorder %v3321_v44, %v1518_v10  ;;  %v1521_v16 = vadd.s32 80, %v3317_v32  ;;  %v1523_v25 = vadd.s32 96, %v3317_v32 }
 0x39f   : > { %v1519_v26 = vadd.s32 64, %v3317_v32  ;;  %v1522_v30 = vadd.s32 88, %v3317_v32  ;;  %v1524_v35 = vadd.s32 104, %v3317_v32  ;;  %v1525_v33 = vadd.s32 112, %v3317_v32 }
 0x3a0   : > { %2439 = vmatmul.mubr.msk.bf16.gmra.mrb[48].mxu1 %vm1186_vm0, %v3200_v42  ;;  %vm1538_vm10 = vcmp.le.s32.totalorder %v3321_v44, %v1520_v12  ;;  %vm1539_vm11 = vcmp.le.s32.totalorder %v3321_v44, %v1521_v16  ;;  %vm1541_vm12 = vcmp.le.s32.totalorder %v3321_v44, %v1523_v25  ;;  %v1526_v43 = vadd.s32 120, %v3317_v32 }
 0x3a1   : > { %2442 = vmatprep.mubr.msk.bf16.mxu1 %vm1186_vm0, %v3211_v56  ;;  %2490 = vmatpush3.bf16.msra.mxu1 %v3257_v52  ;;  %vm1537_vm13 = vcmp.le.s32.totalorder %v3321_v44, %v1519_v26  ;;  %vm1542_vm14 = vcmp.le.s32.totalorder %v3321_v44, %v1524_v35  ;;  %vm1540_vm15 = vcmp.le.s32.totalorder %v3321_v44, %v1522_v30 }
 0x3a2   : > { %vm1544_vm1 = vcmp.le.s32.totalorder %v3321_v44, %v1526_v43 }
 0x3a8   : > { %2443 = vmatmul.mubr.msk.bf16.gmra.mrb[52].mxu1 %vm1186_vm0, %v3206_v53  ;;  %vm1543_vm0 = vcmp.le.s32.totalorder %v3321_v44, %v1525_v33 }
 0x463   : > { %v2432_v46 = vpop.f32.mrb[40].mxu1 }
 0x464   : > { %v1456_v47 = vadd.f32 %v2432_v46, %v3324_v45  ;;  %v1447_v48 = vpop.f32.mrb[41].mxu1 }
 0x465   : > { %v1448_v50 = vadd.f32 %v1447_v48, %v3324_v45  ;;  %v2433_v51 = vpop.f32.mrb[42].mxu1 }
 0x466   : > { %v1459_v52 = vadd.f32 %v2433_v51, %v3324_v45  ;;  %v1450_v54 = vpop.f32.mrb[43].mxu1  ;;  %v3333_v55 = vsel %vm1531_vm2, %v1456_v47, -inf  ;;  %vm1906_vm2 = vcmask 519168  }
 0x467   : > { %v1451_v57 = vadd.f32 %v1450_v54, %v3324_v45  ;;  %1565 = vmax.xlane.f32.xlu1 %v3333_v55  ;;  %v3337_v58 = vsel %vm1529_vm3, %v1448_v50, -inf }
 0x468   : > { %1561 = vmax.xlane.f32.xlu0 %v3337_v58  ;;  %v3344_v0 = vsel %vm1532_vm4, %v1459_v52, -inf }
 0x469   : > { %v3358_v9 = vsel %vm1530_vm6, %v1451_v57, -inf }
 0x46b   : > { %v2436_v62 = vpop.f32.mrb[44].mxu1 }
 0x46c   : > { %v1472_v1 = vadd.f32 %v2436_v62, %v3324_v45  ;;  %v1463_v2 = vpop.f32.mrb[45].mxu1  ;;  %1567 = vmax.xlane.f32.xlu0 %v3344_v0 }
 0x46d   : > { %v1464_v63 = vadd.f32 %v1463_v2, %v3324_v45  ;;  %v2437_v4 = vpop.f32.mrb[46].mxu1 }
 0x46e   : > { %v1475_v5 = vadd.f32 %v2437_v4, %v3324_v45  ;;  %v1466_v6 = vpop.f32.mrb[47].mxu1  ;;  %v3353_v7 = vsel %vm1535_vm5, %v1472_v1, -inf }
 0x46f   : > { %v1467_v8 = vadd.f32 %v1466_v6, %v3324_v45  ;;  %1573 = vmax.xlane.f32.xlu1 %v3353_v7  ;;  %v3367_v14 = vsel %vm1533_vm8, %v1464_v63, -inf }
 0x470   : > { %1563 = vmax.xlane.f32.xlu0 %v3358_v9  ;;  %v3377_v24 = vsel %vm1536_vm9, %v1475_v5, -inf }
 0x471   : > { %v3363_v11 = vsel %vm1534_vm7, %v1467_v8, -inf }
 0x473   : > { %v2440_v13 = vpop.f32.mrb[48].mxu1  ;;  %1571 = vmax.xlane.f32.xlu1 %v3363_v11 }
 0x474   : > { %v1488_v23 = vadd.f32 %v2440_v13, %v3324_v45  ;;  %v1479_v15 = vpop.f32.mrb[49].mxu1  ;;  %1569 = vmax.xlane.f32.xlu0 %v3367_v14 }
 0x475   : > { %v1480_v17 = vadd.f32 %v1479_v15, %v3324_v45  ;;  %v2441_v18 = vpop.f32.mrb[50].mxu1 }
 0x476   : > { %v1491_v19 = vadd.f32 %v2441_v18, %v3324_v45  ;;  %v1482_v20 = vpop.f32.mrb[51].mxu1  ;;  %v3386_v29 = vsel %vm1539_vm11, %v1488_v23, -inf }
 0x477   : > { %v1483_v21 = vadd.f32 %v1482_v20, %v3324_v45  ;;  %v3399_v22 = vsel %vm1537_vm13, %v1480_v17, -inf }
 0x478   : > { %1575 = vmax.xlane.f32.xlu0 %v3377_v24  ;;  %v3409_v47 = vsel %vm1540_vm15, %v1491_v19, -inf }
 0x479   : > { %v3383_v27 = vsel %vm1538_vm10, %v1483_v21, -inf }
 0x47a   : > { %1579 = vmax.xlane.f32.xlu1 %v3383_v27 }
 0x47b   : > { %v2444_v28 = vpop.f32.mrb[52].mxu1 }
 0x47c   : > { %v1504_v31 = vadd.f32 %v2444_v28, %v3324_v45  ;;  %v1495_v34 = vpop.f32.mrb[53].mxu1  ;;  %1581 = vmax.xlane.f32.xlu0 %v3386_v29 }
 0x47d   : > { %v1496_v36 = vadd.f32 %v1495_v34, %v3324_v45  ;;  %v2445_v37 = vpop.f32.mrb[54].mxu1 }
 0x47e   : > { %v1507_v38 = vadd.f32 %v2445_v37, %v3324_v45  ;;  %v1498_v39 = vpop.f32.mrb[55].mxu1 }
 0x47f   : > { %v1499_v40 = vadd.f32 %v1498_v39, %v3324_v45  ;;  %v3397_v41 = vsel %vm1541_vm12, %v1496_v36, -inf  ;;  %v3415_v45 = vsel %vm1543_vm0, %v1504_v31, -inf }
 0x480   : > { %1585 = vmax.xlane.f32.xlu1 %v3397_v41  ;;  %1577 = vmax.xlane.f32.xlu0 %v3399_v22  ;;  %v3417_v48 = vsel %vm1544_vm1, %v1507_v38, -inf }
 0x481   : > { %v3407_v46 = vsel %vm1542_vm14, %v1499_v40, -inf }
 0x484   : > { %1587 = vmax.xlane.f32.xlu1 %v3407_v46  ;;  %1583 = vmax.xlane.f32.xlu0 %v3409_v47 }
 0x488   : > { %1589 = vmax.xlane.f32.xlu1 %v3415_v45  ;;  %1591 = vmax.xlane.f32.xlu0 %v3417_v48 }
 0x49e   : > { %1699 = vrot.lane.b32.xlu0 %v3200_v42, %s2783_s26 }
 0x4a2   : > { %1701 = vrot.lane.b32.xlu0 %v3211_v56, %s2783_s26 }
 0x4a6   : > { %1703 = vrot.lane.b32.xlu0 %v3206_v53, %s2783_s26 }
 0x4f4   : > { %v1566_v32 = vpop.xlane.xlu1 %1565 }
 0x4f5   : > { %v1595_v44 = vsub.f32 %v3333_v55, %v1566_v32  ;;  %v1562_v49 = vpop.xlane.xlu0 %1561 }
 0x4f6   : > { %v1593_v50 = vsub.f32 %v3337_v58, %v1562_v49 }
 0x4f7   : > { %v1613_v51 = vmul.f32 1.442695, %v1595_v44 }
 0x4f8   : > { %v1609_v52 = vmul.f32 1.442695, %v1593_v50 }
 0x4f9   : > { %2584 = vpow2.f32 %v1613_v51  ;;  %v1568_v54 = vpop.xlane.xlu0 %1567 }
 0x4fa   : > { %v1596_v57 = vsub.f32 %v3344_v0, %v1568_v54  ;;  %2586 = vpow2.f32 %v1609_v52 }
 0x4fc   : > { %v1574_v59 = vpop.xlane.xlu1 %1573  ;;  %v1615_v42 = vmul.f32 1.442695, %v1596_v57 }
 0x4fd   : > { %v1599_v56 = vsub.f32 %v3353_v7, %v1574_v59  ;;  %v1564_v60 = vpop.xlane.xlu0 %1563 }
 0x4fe   : > { %v1594_v53 = vsub.f32 %v3358_v9, %v1564_v60  ;;  %2588 = vpow2.f32 %v1615_v42 }
 0x4ff   : > { %v1621_v55 = vmul.f32 1.442695, %v1599_v56 }
 0x500   : > { %v1611_v61 = vmul.f32 1.442695, %v1594_v53  ;;  %v1572_v0 = vpop.xlane.xlu1 %1571 }
 0x501   : > { %v1570_v62 = vpop.xlane.xlu0 %1569  ;;  %v1598_v5 = vsub.f32 %v3363_v11, %v1572_v0 }
 0x502   : > { %2590 = vpow2.f32 %v1611_v61  ;;  %v1597_v58 = vsub.f32 %v3367_v14, %v1570_v62 }
 0x503   : > { %v3433_v1 = vpop.eup %2584  ;;  %2592 = vpow2.f32 %v1621_v55  ;;  %v1619_v14 = vmul.f32 1.442695, %v1598_v5 }
 0x504   : > { %1645 = vadd.xlane.f32.xlu1 %v3433_v1  ;;  %v1617_v2 = vmul.f32 1.442695, %v1597_v58  ;;  %v2587_v4 = vpop.eup %2586 }
 0x505   : > { %v1576_v3 = vpop.xlane.xlu0 %1575 }
 0x506   : > { %v1600_v63 = vsub.f32 %v3377_v24, %v1576_v3  ;;  %2594 = vpow2.f32 %v1617_v2 }
 0x507   : > { %v1580_v7 = vpop.xlane.xlu1 %1579 }
 0x508   : > { %1641 = vadd.xlane.f32.xlu1 %v2587_v4  ;;  %v1623_v6 = vmul.f32 1.442695, %v1600_v63  ;;  %v3439_v10 = vpop.eup %2588  ;;  %v1602_v30 = vsub.f32 %v3383_v27, %v1580_v7 }
 0x509   : > { %v1582_v8 = vpop.xlane.xlu0 %1581  ;;  %v1674_v50 = vpack.c.bf16 %v3439_v10, %v3433_v1 }
 0x50a   : > { %v1603_v9 = vsub.f32 %v3386_v29, %v1582_v8  ;;  %2596 = vpow2.f32 %v1623_v6 }
 0x50c   : > { %v2591_v12 = vpop.eup %2590  ;;  %v1629_v13 = vmul.f32 1.442695, %v1603_v9  ;;  %1647 = vadd.xlane.f32.xlu1 %v3439_v10 }
 0x50d   : > { %v1586_v23 = vpop.xlane.xlu1 %1585  ;;  %1643 = vadd.xlane.f32.xlu0 %v2591_v12  ;;  %v1578_v15 = vpop.xlane.xlu0 %1577  ;;  %v1673_v16 = vpack.c.bf16 %v2591_v12, %v2587_v4 }
 0x50e   : > { %2598 = vpow2.f32 %v1629_v13  ;;  %v1605_v11 = vsub.f32 %v3397_v41, %v1586_v23  ;;  %v1601_v17 = vsub.f32 %v3399_v22, %v1578_v15  ;;  %v3444_v18 = vpop.eup %2592  ;;  %v1627_v22 = vmul.f32 1.442695, %v1602_v30 }
 0x50f   : > { %2462 = vmatprep.mubr.bf16.mxu0 %v1673_v16  ;;  %2600 = vpow2.f32 %v1619_v14 }
 0x510   : > { %v1633_v19 = vmul.f32 1.442695, %v1605_v11  ;;  %1653 = vadd.xlane.f32.xlu1 %v3444_v18  ;;  %v1625_v20 = vmul.f32 1.442695, %v1601_v17  ;;  %v2595_v28 = vpop.eup %2594 }
 0x511   : > { %v1588_v21 = vpop.xlane.xlu1 %1587  ;;  %v1584_v24 = vpop.xlane.xlu0 %1583 }
 0x512   : > { %2602 = vpow2.f32 %v1633_v19  ;;  %v1606_v25 = vsub.f32 %v3407_v46, %v1588_v21  ;;  %v1604_v26 = vsub.f32 %v3409_v47, %v1584_v24 }
 0x513   : > { %2604 = vpow2.f32 %v1625_v20 }
 0x514   : > { %v1635_v29 = vmul.f32 1.442695, %v1606_v25  ;;  %1649 = vadd.xlane.f32.xlu1 %v2595_v28  ;;  %v1631_v31 = vmul.f32 1.442695, %v1604_v26  ;;  %v2597_v38 = vpop.eup %2596 }
 0x515   : > { %v1590_v34 = vpop.xlane.xlu1 %1589  ;;  %v1592_v35 = vpop.xlane.xlu0 %1591  ;;  %v1676_v59 = vpack.c.bf16 %v2597_v38, %v3444_v18 }
 0x516   : > { %2606 = vpow2.f32 %v1635_v29  ;;  %v1607_v36 = vsub.f32 %v3415_v45, %v1590_v34  ;;  %v1608_v37 = vsub.f32 %v3417_v48, %v1592_v35 }
 0x517   : > { %2608 = vpow2.f32 %v1631_v31 }
 0x518   : > { %v2599_v39 = vpop.eup %2598  ;;  %v1637_v40 = vmul.f32 1.442695, %v1607_v36  ;;  %v1639_v41 = vmul.f32 1.442695, %v1608_v37  ;;  %1655 = vadd.xlane.f32.xlu1 %v2597_v38 }
 0x519   : > { %1661 = vadd.xlane.f32.xlu0 %v2599_v39  ;;  %v1700_v33 = vpop.permute.xlu0 %1699  ;;  %v2601_v27 = vpop.eup %2600 }
 0x51a   : > { %2610 = vpow2.f32 %v1637_v40  ;;  %2456 = vmatprep.subr.bf16.mxu0 %v1700_v33  ;;  %2483 = vmatprep.subr.bf16.mxu1 %v1700_v33  ;;  %v1675_v52 = vpack.c.bf16 %v2601_v27, %v2595_v28 }
 0x51b   : > { %2612 = vpow2.f32 %v1639_v41  ;;  %2457 = vmatpush3.bf16.msra.mxu0 %v1700_v33  ;;  %2491 = vmatpush3.bf16.msra.mxu1 %v1700_v33 }
 0x51c   : > { %v2603_v43 = vpop.eup %2602  ;;  %1651 = vadd.xlane.f32.xlu1 %v2601_v27  ;;  %2614 = vpow2.f32 %v1627_v22 }
 0x51d   : > { %1665 = vadd.xlane.f32.xlu0 %v2603_v43  ;;  %v1702_v46 = vpop.permute.xlu0 %1701  ;;  %v2605_v47 = vpop.eup %2604 }
 0x51e   : > { %2458 = vmatprep.subr.bf16.mxu0 %v1702_v46  ;;  %2484 = vmatprep.subr.bf16.mxu1 %v1702_v46 }
 0x51f   : > { %2459 = vmatpush3.bf16.msra.mxu0 %v1702_v46  ;;  %2492 = vmatpush3.bf16.msra.mxu1 %v1702_v46 }
 0x520   : > { %v2607_v45 = vpop.eup %2606  ;;  %1657 = vadd.xlane.f32.xlu1 %v2605_v47 }
 0x521   : > { %v1704_v48 = vpop.permute.xlu0 %1703  ;;  %v1679_v32 = vpack.c.bf16 %v2607_v45, %v2603_v43  ;;  %v2609_v44 = vpop.eup %2608 }
 0x522   : > { %2460 = vmatprep.subr.bf16.mxu0 %v1704_v48  ;;  %2485 = vmatprep.subr.bf16.mxu1 %v1704_v48  ;;  %v1678_v56 = vpack.c.bf16 %v2609_v44, %v2599_v39 }
 0x523   : > { %2461 = vmatpush3.bf16.msra.mxu0 %v1704_v48  ;;  %2493 = vmatpush3.bf16.msra.mxu1 %v1704_v48 }
 0x524   : > { %v2611_v49 = vpop.eup %2610  ;;  %2474 = vmatprep.mubr.bf16.mxu1 %v1679_v32  ;;  %1663 = vadd.xlane.f32.xlu1 %v2609_v44 }
 0x525   : > { %v2613_v51 = vpop.eup %2612  ;;  %1669 = vadd.xlane.f32.xlu0 %v2611_v49 }
 0x526   : > { %2463 = vmatmul.mubr.bf16.vlgmr.msra.gmra.mrb[36].mxu0 %v1674_v50  ;;  %v1680_v54 = vpack.c.bf16 %v2613_v51, %v2611_v49  ;;  %v2615_v57 = vpop.eup %2614 }
 0x527   : > { %2466 = vmatprep.mubr.bf16.mxu0 %v1675_v52  ;;  %v1677_v42 = vpack.c.bf16 %v2615_v57, %v2605_v47 }
 0x528   : > { %2475 = vmatmul.mubr.bf16.vlgmr.msra.gmra.mrb[56].mxu1 %v1680_v54  ;;  %1659 = vadd.xlane.f32.xlu1 %v2615_v57 }
 0x52c   : > { %1667 = vadd.xlane.f32.xlu1 %v2607_v45 }
 0x52e   : > { %2467 = vmatmul.mubr.bf16.gmra.mrb[40].mxu0 %v1676_v59 }
 0x52f   : > { %2470 = vmatprep.mubr.bf16.mxu0 %v1677_v42 }
 0x530   : > { %1671 = vadd.xlane.f32.xlu1 %v2613_v51 }
 0x536   : > { %2471 = vmatmul.mubr.bf16.gmra.mrb[44].mxu0 %v1678_v56 }
 0x591   : > { %v1646_v60 = vpop.xlane.xlu1 %1645 }
 0x592   : > { %2616 = vrcp.f32 %v1646_v60 }
 0x595   : > { %v1642_v53 = vpop.xlane.xlu1 %1641 }
 0x596   : > { %2618 = vrcp.f32 %v1642_v53 }
 0x599   : > { %v1648_v61 = vpop.xlane.xlu1 %1647 }
 0x59a   : > { %v1644_v3 = vpop.xlane.xlu0 %1643  ;;  %2620 = vrcp.f32 %v1648_v61 }
 0x59b   : > { %2622 = vrcp.f32 %v1644_v3 }
 0x59c   : > { %v2617_v9 = vpop.eup %2616 }
 0x59d   : > { %v1654_v55 = vpop.xlane.xlu1 %1653 }
 0x5a0   : > { %v2619_v10 = vpop.eup %2618 }
 0x5a1   : > { %v1650_v62 = vpop.xlane.xlu1 %1649 }
 0x5a4   : > { %v2621_v12 = vpop.eup %2620 }
 0x5a5   : > { %v1656_v58 = vpop.xlane.xlu1 %1655  ;;  %v2623_v14 = vpop.eup %2622 }
 0x5a6   : > { %v1662_v63 = vpop.xlane.xlu0 %1661 }
 0x5a9   : > { %v1652_v1 = vpop.xlane.xlu1 %1651 }
 0x5aa   : > { %v1666_v5 = vpop.xlane.xlu0 %1665 }
 0x5ad   : > { %v1658_v0 = vpop.xlane.xlu1 %1657 }
 0x5b1   : > { %v1664_v2 = vpop.xlane.xlu1 %1663 }
 0x5b2   : > { %v1670_v7 = vpop.xlane.xlu0 %1669 }
 0x5b3   : > { %2624 = vrcp.f32 %v1670_v7 }
 0x5b4   : > { %2626 = vrcp.f32 %v1666_v5 }
 0x5b5   : > { %v3455_v4 = vpop.xlane.xlu1 %1659 }
 0x5b9   : > { %v1668_v6 = vpop.xlane.xlu1 %1667 }
 0x5bd   : > { %v1672_v8 = vpop.xlane.xlu1 %1671  ;;  %v2625_v16 = vpop.eup %2624 }
 0x5be   : > { %2628 = vrcp.f32 %v1672_v8  ;;  %v2627_v19 = vpop.eup %2626 }
 0x5bf   : > { %2630 = vrcp.f32 %v1668_v6 }
 0x5c0   : > { %2632 = vrcp.f32 %v1654_v55 }
 0x5c1   : > { %2634 = vrcp.f32 %v1650_v62 }
 0x5c2   : > { %2636 = vrcp.f32 %v1656_v58 }
 0x5c3   : > { %2638 = vrcp.f32 %v1652_v1 }
 0x5c4   : > { %2640 = vrcp.f32 %v1662_v63 }
 0x5c5   : > { %2642 = vrcp.f32 %v1658_v0 }
 0x5c6   : > { %2644 = vrcp.f32 %v1664_v2 }
 0x5c7   : > { %2646 = vrcp.f32 %v3455_v4 }
 0x5c8   : > { %v2629_v28 = vpop.eup %2628 }
 0x5c9   : > { %v2631_v35 = vpop.eup %2630 }
 0x5ca   : > { %v2633_v27 = vpop.eup %2632 }
 0x5cb   : > { %v2635_v47 = vpop.eup %2634 }
 0x5cc   : > { %v2637_v32 = vpop.eup %2636 }
 0x5cd   : > { %v2639_v50 = vpop.eup %2638 }
 0x5ce   : > { %v2641_v60 = vpop.eup %2640 }
 0x5cf   : > { %v2643_v61 = vpop.eup %2642 }
 0x5d0   : > { %v2645_v58 = vpop.eup %2644 }
 0x5d1   : > { %v2647_v2 = vpop.eup %2646 }
 0x5f9   : > { %v2464_v13 = vpop.f32.mrb[36].mxu0 }
 0x5fa   : > { %v1828_v23 = vmul.f32 %v2617_v9, %v2464_v13  ;;  %v1747_v15 = vpop.f32.mrb[37].mxu0 }
 0x5fb   : > { %v1826_v11 = vmul.f32 %v2619_v10, %v1747_v15  ;;  %v2476_v17 = vpop.f32.mrb[56].mxu1  ;;  %v2465_v18 = vpop.f32.mrb[38].mxu0 }
 0x5fc   : > { %v2123_v20 = vpack.c.bf16 %v1828_v23, %v1828_v23  ;;  %v1840_v21 = vmul.f32 %v2625_v16, %v2476_v17  ;;  %v1829_v24 = vmul.f32 %v2621_v12, %v2465_v18  ;;  %v1795_v25 = vpop.f32.mrb[57].mxu1  ;;  %v1750_v26 = vpop.f32.mrb[39].mxu0 }
 0x5fd   : > { %v2121_v29 = vpack.c.bf16 %v1826_v11, %v1826_v11  ;;  %v1838_v30 = vmul.f32 %v2627_v19, %v1795_v25  ;;  %v1827_v31 = vmul.f32 %v2623_v14, %v1750_v26  ;;  %v2477_v34 = vpop.f32.mrb[58].mxu1 }
 0x5fe   : > { %1909 = vst.msk [vmem:[%s3462_s22 + $0x8] sm:$0xf] %vm1906_vm2, %v2123_v20  ;;  %v2135_v36 = vpack.c.bf16 %v1840_v21, %v1840_v21  ;;  %v2124_v37 = vpack.c.bf16 %v1829_v24, %v1829_v24  ;;  %v1841_v38 = vmul.f32 %v2629_v28, %v2477_v34  ;;  %v1798_v39 = vpop.f32.mrb[59].mxu1 }
 0x5ff   : > { %1907 = vst.msk [vmem:[%s3462_s22] sm:$0xf] %vm1906_vm2, %v2121_v29  ;;  %v2133_v40 = vpack.c.bf16 %v1838_v30, %v1838_v30  ;;  %v2122_v41 = vpack.c.bf16 %v1827_v31, %v1827_v31  ;;  %v1839_v22 = vmul.f32 %v2631_v35, %v1798_v39 }
 0x600   : > { %1921 = vst.msk [vmem:[%s3462_s22 + $0x38] sm:$0xf] %vm1906_vm2, %v2135_v36  ;;  %1910 = vst.msk [vmem:[%s3462_s22 + $0xc] sm:$0xf] %vm1906_vm2, %v2124_v37  ;;  %v2136_v33 = vpack.c.bf16 %v1841_v38, %v1841_v38 }
 0x601   : > { %1919 = vst.msk [vmem:[%s3462_s22 + $0x30] sm:$0xf] %vm1906_vm2, %v2133_v40  ;;  %1908 = vst.msk [vmem:[%s3462_s22 + $0x4] sm:$0xf] %vm1906_vm2, %v2122_v41  ;;  %v2134_v43 = vpack.c.bf16 %v1839_v22, %v1839_v22  ;;  %v2468_v46 = vpop.f32.mrb[40].mxu0 }
 0x602   : > { %1922 = vst.msk [vmem:[%s3462_s22 + $0x3c] sm:$0xf] %vm1906_vm2, %v2136_v33  ;;  %v1832_v45 = vmul.f32 %v2633_v27, %v2468_v46  ;;  %v1763_v48 = vpop.f32.mrb[41].mxu0 }
 0x603   : > { %1920 = vst.msk [vmem:[%s3462_s22 + $0x34] sm:$0xf] %vm1906_vm2, %v2134_v43  ;;  %v1830_v44 = vmul.f32 %v2635_v47, %v1763_v48  ;;  %v2469_v49 = vpop.f32.mrb[42].mxu0 }
 0x604   : > { %v2127_v51 = vpack.c.bf16 %v1832_v45, %v1832_v45  ;;  %v1833_v52 = vmul.f32 %v2637_v32, %v2469_v49  ;;  %v1766_v54 = vpop.f32.mrb[43].mxu0 }
 0x605   : > { %v2125_v57 = vpack.c.bf16 %v1830_v44, %v1830_v44  ;;  %v1831_v59 = vmul.f32 %v2639_v50, %v1766_v54 }
 0x606   : > { %1913 = vst.msk [vmem:[%s3462_s22 + $0x18] sm:$0xf] %vm1906_vm2, %v2127_v51  ;;  %v2128_v42 = vpack.c.bf16 %v1833_v52, %v1833_v52 }
 0x607   : > { %1911 = vst.msk [vmem:[%s3462_s22 + $0x10] sm:$0xf] %vm1906_vm2, %v2125_v57  ;;  %v2126_v56 = vpack.c.bf16 %v1831_v59, %v1831_v59 }
 0x608   : > { %1914 = vst.msk [vmem:[%s3462_s22 + $0x1c] sm:$0xf] %vm1906_vm2, %v2128_v42 }
 0x609   : > { %1912 = vst.msk [vmem:[%s3462_s22 + $0x14] sm:$0xf] %vm1906_vm2, %v2126_v56  ;;  %v2472_v53 = vpop.f32.mrb[44].mxu0 }
 0x60a   : > { %v1836_v55 = vmul.f32 %v2641_v60, %v2472_v53  ;;  %v1779_v62 = vpop.f32.mrb[45].mxu0 }
 0x60b   : > { %v1834_v1 = vmul.f32 %v2643_v61, %v1779_v62  ;;  %v2473_v0 = vpop.f32.mrb[46].mxu0 }
 0x60c   : > { %v2131_v3 = vpack.c.bf16 %v1836_v55, %v1836_v55  ;;  %v1837_v63 = vmul.f32 %v2645_v58, %v2473_v0  ;;  %v1782_v4 = vpop.f32.mrb[47].mxu0 }
 0x60d   : > { %v2129_v5 = vpack.c.bf16 %v1834_v1, %v1834_v1  ;;  %v1835_v6 = vmul.f32 %v2647_v2, %v1782_v4 }
 0x60e   : > { %1917 = vst.msk [vmem:[%s3462_s22 + $0x28] sm:$0xf] %vm1906_vm2, %v2131_v3  ;;  %v2132_v7 = vpack.c.bf16 %v1837_v63, %v1837_v63 }
 0x60f   : > { %1915 = vst.msk [vmem:[%s3462_s22 + $0x20] sm:$0xf] %vm1906_vm2, %v2129_v5  ;;  %v2130_v8 = vpack.c.bf16 %v1835_v6, %v1835_v6 }
 0x610   : > { %1918 = vst.msk [vmem:[%s3462_s22 + $0x2c] sm:$0xf] %vm1906_vm2, %v2132_v7 }
 0x611   : > { %1916 = vst.msk [vmem:[%s3462_s22 + $0x24] sm:$0xf] %vm1906_vm2, %v2130_v8 }
 0x612 PF: > { %s3551_s20 = sld [smem:[#allocation9_spill]]  ;;  %s3552_s21 = sld [smem:[#allocation10_spill]] }
 0x613   : > { %s3553_s17 = smov %s2768_s18  ;;  %s3554_s18 = smov %s2772_s19 }
 0x618   : > { %p24_p2 = scmp.ge.s32.totalorder %s3551_s20, 6   ;;  %s3555_s19 = smov %s3552_s21 }
 0x61a   :  { %26 = sbr.rel (!%p24_p2) target bundleno = 10 (0xa), region = 128 }
 0x621   :  { %1944 = vsyncpa [#allocation3], 1 }
 0x622   :  { %1946 = vsyncpa [#allocation3 + $0x1], 1 }
 0x623   :  { %1947 = vsyncpa [#allocation5], 1 }
 0x624   :  { %1949 = vsyncpa [#allocation5 + $0x1], 1 }

</bundles_post_ra>
